<compile_context>
chip_gen: v6e
topology: v6e:2x2x1
jax: 0.10.0
libtpu: 0.0.40
codegen_flags: <defaults>
</compile_context>

<pallas_src>
import math
import functools

import jax
import jax.numpy as jnp
from jax import lax
from jax.experimental import pallas as pl
from jax.experimental.pallas import tpu as pltpu


def _round_up(x, m):
    return (x + m - 1) // m * m


def _sigmoid(x):
    # One EUP transcendental (tanh) instead of exp + divide.
    return 0.5 * jnp.tanh(0.5 * x) + 0.5


def _vmem_limit_bytes():
    """~3/4 of physical VMEM, capped at 100 MiB (v5e/v6e: ~96 MiB, v7x: 48 MiB)."""
    try:
        cap = pltpu.get_tpu_info().vmem_capacity_bytes
    except Exception:
        cap = 64 * 1024 * 1024
    return int(min(cap * 3 // 4, 100 * 1024 * 1024))


def _max_time_block_for_vmem(Bb, e_in, Hp, vmem_limit):
    """Largest Tb such that the recurrence kernel's per-step VMEM fits w/ headroom."""
    g4 = 4 * Hp
    fixed = (e_in * g4 * 2        # W_ih bf16 (resident)
             + Hp * g4 * 2        # W_hh bf16 (resident)
             + g4 * 4             # bias f32
             + 8 * Bb * Hp * 4)   # h0/c0 inputs + hN/cN outputs (generous)
    per_tb = (2 * Bb * e_in * 2   # x block, double-buffered, bf16
              + 2 * Bb * Hp * 2   # y block, double-buffered, bf16
              + Bb * g4 * 4)      # gx scratch f32
    budget = int(vmem_limit * 0.6) - fixed
    return max(1, budget // per_tb)


def _pick_time_block(T, max_tb):
    """Pick Tb <= max_tb minimizing grid steps + padded-timestep waste."""
    cands = [tb for tb in (32, 16, 8, 4, 2, 1) if tb <= max_tb] or [1]
    # score ~ n_grid_steps * (tb + overhead_equiv_of_2_timesteps)
    return min(cands, key=lambda tb: ((-(-T // tb)) * (tb + 2), -tb))


def _pick_batch_split(Bp):
    # 2-way batch split engages the 2nd TensorCore (v7x); needs 8-aligned halves.
    return 2 if (Bp >= 16 and Bp % 16 == 0) else 1


# ----------------------------------------------------------------------------
# Tiled matmul (+bias) kernel: used for the final FC projection.
# ----------------------------------------------------------------------------
def _matmul_bias_kernel(x_ref, w_ref, b_ref, o_ref, acc_ref):
    k = pl.program_id(2)

    @pl.when(k == 0)
    def _():
        acc_ref[...] = jnp.zeros_like(acc_ref)

    acc_ref[...] += jnp.dot(x_ref[...], w_ref[...],
                            preferred_element_type=jnp.float32)

    @pl.when(k == pl.num_programs(2) - 1)
    def _():
        o_ref[...] = (acc_ref[...] + b_ref[...]).astype(o_ref.dtype)


def matmul_bias_pallas(x, w, b, *, out_dtype=jnp.float32, vmem_limit=None,
                       tm=512, tn=512, tk=512):
    """(M, K) @ (K, N) + (1, N) -> (M, N) with an f32 accumulator."""
    if vmem_limit is None:
        vmem_limit = _vmem_limit_bytes()
    M, K = x.shape
    Kw, N = w.shape
    assert K == Kw
    Kp128 = _round_up(K, 128)
    # Collapse the k axis when K fits a single tile: both remaining grid axes
    # are then megacore-parallel and the accumulator is written exactly once.
    tk = Kp128 if Kp128 <= 1024 else min(tk, Kp128)
    tm = min(tm, _round_up(M, 8))
    tn = min(tn, _round_up(N, 128))
    Mp, Np, Kp = _round_up(M, tm), _round_up(N, tn), _round_up(K, tk)

    xp = jnp.pad(x, ((0, Mp - M), (0, Kp - K))) if (Mp, Kp) != (M, K) else x
    wp = jnp.pad(w, ((0, Kp - K), (0, Np - N))) if (Kp, Np) != (K, N) else w
    bp = jnp.pad(b, ((0, 0), (0, Np - N))) if Np != N else b

    out = pl.pallas_call(
        _matmul_bias_kernel,
        out_shape=jax.ShapeDtypeStruct((Mp, Np), out_dtype),
        grid_spec=pltpu.PrefetchScalarGridSpec(
            num_scalar_prefetch=0,
            grid=(Mp // tm, Np // tn, Kp // tk),
            in_specs=[
                pl.BlockSpec((tm, tk), lambda i, j, k: (i, k)),
                pl.BlockSpec((tk, tn), lambda i, j, k: (k, j)),
                pl.BlockSpec((1, tn), lambda i, j, k: (0, j)),
            ],
            out_specs=pl.BlockSpec((tm, tn), lambda i, j, k: (i, j)),
            scratch_shapes=[pltpu.VMEM((tm, tn), jnp.float32)],
        ),
        compiler_params=pltpu.CompilerParams(
            dimension_semantics=("parallel", "parallel", "arbitrary"),
            vmem_limit_bytes=vmem_limit),
    )(xp, wp, bp)
    if (Mp, Np) != (M, N):
        out = out[:M, :N]
    return out


# ----------------------------------------------------------------------------
# Fused LSTM layer kernel: per Tb-block of timesteps, one MXU matmul computes
# gx = x @ W_ih + b into VMEM scratch (never touches HBM), then the sequential
# loop only does h @ W_hh + elementwise gates.  h/c state lives directly in
# the hN/cN output blocks (constant index_map => VMEM-resident accumulators).
# ----------------------------------------------------------------------------
def _lstm_layer_kernel(x_ref, w_ih_ref, w_hh_ref, b_ref, h0_ref, c0_ref,
                       y_ref, hN_ref, cN_ref, gx_sc, *,
                       hidden_p, t_block, t_valid, apply_mask, unroll):
    t_blk = pl.program_id(1)

    @pl.when(t_blk == 0)
    def _():
        hN_ref[...] = h0_ref[...]
        cN_ref[...] = c0_ref[...]

    Hp = hidden_p
    Tb, Bb, Ein = x_ref.shape

    # Hoisted input projection for the whole Tb block: one big MXU matmul.
    gx_sc[...] = (jnp.dot(x_ref[...].reshape(Tb * Bb, Ein), w_ih_ref[...],
                          preferred_element_type=jnp.float32)
                  + b_ref[...])

    w_hh = w_hh_ref[...]                       # (Hp, 4Hp) bf16, resident
    t0 = t_blk * t_block

    # TODO(synk): weight-stationary MXU driving (matmul_push_rhs/acc_lhs/pop)
    # would keep W_hh in the MXU staging registers across the unrolled steps.
    def step(i, carry):
        h, c = carry
        row0 = pl.multiple_of(i * Bb, Bb)
        gates = (gx_sc[pl.ds(row0, Bb), :]
                 + jnp.dot(h.astype(w_hh.dtype), w_hh,
                           preferred_element_type=jnp.float32))
        i_g = _sigmoid(gates[:, 0 * Hp:1 * Hp])
        f_g = _sigmoid(gates[:, 1 * Hp:2 * Hp])
        g_g = jnp.tanh(gates[:, 2 * Hp:3 * Hp])
        o_g = _sigmoid(gates[:, 3 * Hp:4 * Hp])
        c_new = f_g * c + i_g * g_g
        h_new = o_g * jnp.tanh(c_new)
        if apply_mask:
            # Timesteps beyond the real sequence length (T padded up to a
            # multiple of Tb) must not advance the state.
            valid = (t0 + i) < t_valid
            h_new = jnp.where(valid, h_new, h)
            c_new = jnp.where(valid, c_new, c)
        y_ref[i] = h_new.astype(y_ref.dtype)
        return h_new, c_new

    h, c = lax.fori_loop(0, t_block, step, (hN_ref[...], cN_ref[...]),
                         unroll=unroll)
    hN_ref[...] = h
    cN_ref[...] = c


def lstm_layer_pallas(x, w_ih, w_hh, bias, h0, c0, *, t_valid, t_block,
                      n_b_blocks, vmem_limit):
    """x: (T_pad, Bp, Ein) bf16.  Returns (y bf16 (T_pad,Bp,Hp), hN f32, cN f32)."""
    T_pad, Bp, Ein = x.shape
    Hp = w_hh.shape[0]
    G4 = 4 * Hp
    Bb = Bp // n_b_blocks
    nt = T_pad // t_block
    unroll = max(1, min(t_block, 8))          # cap unroll -> no vreg spills

    kernel = functools.partial(
        _lstm_layer_kernel, hidden_p=Hp, t_block=t_block, t_valid=t_valid,
        apply_mask=(t_valid < T_pad), unroll=unroll)

    y, hN, cN = pl.pallas_call(
        kernel,
        out_shape=(
            jax.ShapeDtypeStruct((T_pad, Bp, Hp), jnp.bfloat16),
            jax.ShapeDtypeStruct((Bp, Hp), jnp.float32),
            jax.ShapeDtypeStruct((Bp, Hp), jnp.float32),
        ),
        grid_spec=pltpu.PrefetchScalarGridSpec(
            num_scalar_prefetch=0,
            grid=(n_b_blocks, nt),
            in_specs=[
                pl.BlockSpec((t_block, Bb, Ein), lambda b, t: (t, b, 0)),  # x
                pl.BlockSpec((Ein, G4), lambda b, t: (0, 0)),              # W_ih
                pl.BlockSpec((Hp, G4), lambda b, t: (0, 0)),               # W_hh
                pl.BlockSpec((1, G4), lambda b, t: (0, 0)),                # bias
                pl.BlockSpec((Bb, Hp), lambda b, t: (b, 0)),               # h0
                pl.BlockSpec((Bb, Hp), lambda b, t: (b, 0)),               # c0
            ],
            out_specs=[
                pl.BlockSpec((t_block, Bb, Hp), lambda b, t: (t, b, 0)),   # y
                pl.BlockSpec((Bb, Hp), lambda b, t: (b, 0)),               # hN
                pl.BlockSpec((Bb, Hp), lambda b, t: (b, 0)),               # cN
            ],
            scratch_shapes=[pltpu.VMEM((t_block * Bb, G4), jnp.float32)],  # gx
        ),
        compiler_params=pltpu.CompilerParams(
            dimension_semantics=("parallel", "arbitrary"),
            vmem_limit_bytes=vmem_limit),
    )(x, w_ih, w_hh, bias, h0, c0)
    return y, hN, cN


# ----------------------------------------------------------------------------
# Parameter init (mirrors the PyTorch module's init_weights, eval mode).
# Weights are stored pre-transposed, gate-padded to 128-lane boundaries, bf16.
# ----------------------------------------------------------------------------
def _pad_gate_cols(a, H, Hp):
    """(..., 4H) -> (..., 4Hp) with gate g placed at columns [g*Hp, g*Hp+H)."""
    if H == Hp:
        return a
    parts = []
    for g in range(4):
        blk = a[..., g * H:(g + 1) * H]
        pad_width = [(0, 0)] * (a.ndim - 1) + [(0, Hp - H)]
        parts.append(jnp.pad(blk, pad_width))
    return jnp.concatenate(parts, axis=-1)


def init_params(key, vocab_size, embedding_dim, hidden_dim, num_layers,
                param_dtype=jnp.bfloat16):
    V, E, H = vocab_size, embedding_dim, hidden_dim
    Vp, Ep, Hp = _round_up(V, 128), _round_up(E, 128), _round_up(H, 128)
    r_emb = 0.1
    r = 1.0 / math.sqrt(H)
    keys = jax.random.split(key, 2 + 4 * num_layers)

    params = {"dims": dict(V=V, E=E, H=H, Vp=Vp, Ep=Ep, Hp=Hp, L=num_layers)}

    emb = jax.random.uniform(keys[0], (V, E), jnp.float32, -r_emb, r_emb)
    params["embedding_p"] = jnp.pad(emb, ((0, 0), (0, Ep - E)))

    fc_w = jax.random.uniform(keys[1], (H, V), jnp.float32, -r, r)   # fc.weight.T
    params["fc_w_t"] = jnp.pad(fc_w, ((0, Hp - H), (0, Vp - V))).astype(param_dtype)
    params["fc_b"] = jnp.zeros((1, Vp), jnp.float32)

    # NOTE: the padded-column invariant (padded h/c columns stay exactly 0)
    # relies on per-gate zero padding below; any external checkpoint loader
    # must pad per gate, not the contiguous 4H axis.
    params["lstm"] = []
    for l in range(num_layers):
        in_dim = E if l == 0 else H
        in_p = Ep if l == 0 else Hp
        k0, k1, k2, k3 = keys[2 + 4 * l: 6 + 4 * l]
        w_ih = jax.random.uniform(k0, (in_dim, 4 * H), jnp.float32, -r, r)
        w_hh = jax.random.uniform(k1, (H, 4 * H), jnp.float32, -r, r)
        b_ih = jax.random.uniform(k2, (4 * H,), jnp.float32, -r, r)
        b_hh = jax.random.uniform(k3, (4 * H,), jnp.float32, -r, r)
        bias = (b_ih + b_hh).reshape(1, 4 * H)
        w_ih_p = _pad_gate_cols(jnp.pad(w_ih, ((0, in_p - in_dim), (0, 0))), H, Hp)
        w_hh_p = _pad_gate_cols(jnp.pad(w_hh, ((0, Hp - H), (0, 0))), H, Hp)
        bias_p = _pad_gate_cols(bias, H, Hp)
        params["lstm"].append((w_ih_p.astype(param_dtype),
                               w_hh_p.astype(param_dtype),
                               bias_p))                       # bias stays f32
    return params


# ----------------------------------------------------------------------------
# Forward pass (mirrors PyTorch LSTM.forward, eval mode).
# ----------------------------------------------------------------------------
def lstm_forward(params, src, hidden):
    """src: (B, T) int32; hidden: (h0, c0) each (L, B, H).
    Returns (prediction (B, T, V), (hN, cN))."""
    d = params["dims"]
    H, Hp, V, Ep = d["H"], d["Hp"], d["V"], d["Ep"]
    B, T = src.shape
    Bp = _round_up(B, 8)
    h0_all, c0_all = hidden

    vmem_limit = _vmem_limit_bytes()
    nb = _pick_batch_split(Bp)
    Bb = Bp // nb
    max_tb = _max_time_block_for_vmem(Bb, max(Ep, Hp), Hp, vmem_limit)
    Tb = _pick_time_block(T, max_tb)
    T_pad = _round_up(T, Tb)

    # Time-major embedding gather (no big HBM transpose); dropout = identity.
    src_p = jnp.pad(src, ((0, Bp - B), (0, 0)))
    x = params["embedding_p"][src_p.T].astype(jnp.bfloat16)       # (T, Bp, Ep)
    if T_pad != T:
        x = jnp.pad(x, ((0, T_pad - T), (0, 0), (0, 0)))

    h0p = jnp.pad(h0_all, ((0, 0), (0, Bp - B), (0, Hp - H)))
    c0p = jnp.pad(c0_all, ((0, 0), (0, Bp - B), (0, Hp - H)))

    hN_list, cN_list = [], []
    for l, (w_ih, w_hh, bias) in enumerate(params["lstm"]):
        y, hN, cN = lstm_layer_pallas(
            x, w_ih, w_hh, bias, h0p[l], c0p[l],
            t_valid=T, t_block=Tb, n_b_blocks=nb, vmem_limit=vmem_limit)
        x = y                                                  # (T_pad, Bp, Hp) bf16
        hN_list.append(hN[:B, :H])
        cN_list.append(cN[:B, :H])
        # inter-layer dropout is identity in eval mode

    out = jnp.transpose(x[:T], (1, 0, 2))[:B].reshape(B * T, Hp)   # (B*T, Hp) bf16
    logits = matmul_bias_pallas(out, params["fc_w_t"], params["fc_b"],
                                vmem_limit=vmem_limit)
    pred = logits.reshape(B, T, -1)[:, :, :V]
    return pred, (jnp.stack(hN_list, 0), jnp.stack(cN_list, 0))


# ----------------------------------------------------------------------------
# Pure-JAX reference with identical numerics (bf16 matmul inputs, f32 acc).
# ----------------------------------------------------------------------------
def lstm_forward_ref(params, src, hidden):
    d = params["dims"]
    H, Hp, V = d["H"], d["Hp"], d["V"]
    B, T = src.shape
    Bp = _round_up(B, 8)
    h0_all, c0_all = hidden

    src_p = jnp.pad(src, ((0, Bp - B), (0, 0)))
    x = params["embedding_p"][src_p.T].astype(jnp.bfloat16)
    h0p = jnp.pad(h0_all, ((0, 0), (0, Bp - B), (0, Hp - H)))
    c0p = jnp.pad(c0_all, ((0, 0), (0, Bp - B), (0, Hp - H)))

    hN_list, cN_list = [], []
    for l, (w_ih, w_hh, bias) in enumerate(params["lstm"]):
        gx = (jnp.dot(x.reshape(T * Bp, -1), w_ih,
                      preferred_element_type=jnp.float32)
              + bias).reshape(T, Bp, 4 * Hp)

        def step(carry, g_t, w_hh=w_hh):
            h, c = carry
            g = g_t + jnp.dot(h.astype(w_hh.dtype), w_hh,
                              preferred_element_type=jnp.float32)
            i_g = _sigmoid(g[:, 0 * Hp:1 * Hp])
            f_g = _sigmoid(g[:, 1 * Hp:2 * Hp])
            g_g = jnp.tanh(g[:, 2 * Hp:3 * Hp])
            o_g = _sigmoid(g[:, 3 * Hp:4 * Hp])
            c = f_g * c + i_g * g_g
            h = o_g * jnp.tanh(c)
            return (h, c), h.astype(jnp.bfloat16)

        (hN, cN), ys = lax.scan(step, (h0p[l], c0p[l]), gx)
        x = ys
        hN_list.append(hN[:B, :H])
        cN_list.append(cN[:B, :H])

    out = jnp.transpose(x, (1, 0, 2))[:B].reshape(B * T, Hp)
    logits = (jnp.dot(out, params["fc_w_t"],
                      preferred_element_type=jnp.float32)
              + params["fc_b"]).reshape(B, T, -1)[:, :, :V]
    return logits, (jnp.stack(hN_list, 0), jnp.stack(cN_list, 0))


if __name__ == "__main__":
    vocab_size = 64
    embedding_dim = 32
    hidden_dim = 32
    num_layers = 2
    batch = 2
    seq = 8

    key = jax.random.PRNGKey(0)
    kp, kx = jax.random.split(key)
    params = init_params(kp, vocab_size, embedding_dim, hidden_dim, num_layers)

    src = jax.random.randint(kx, (batch, seq), 0, vocab_size, dtype=jnp.int32)
    h0 = jnp.zeros((num_layers, batch, hidden_dim), jnp.float32)
    c0 = jnp.zeros((num_layers, batch, hidden_dim), jnp.float32)

    pred, (hN, cN) = lstm_forward(params, src, (h0, c0))
    jax.block_until_ready((pred, hN, cN))

    pred_ref, (hN_ref, cN_ref) = lstm_forward_ref(params, src, (h0, c0))
    assert pred.shape == (batch, seq, vocab_size)
    assert hN.shape == (num_layers, batch, hidden_dim)
    assert cN.shape == (num_layers, batch, hidden_dim)
    assert jnp.allclose(pred, pred_ref, atol=2e-3, rtol=2e-2)
    assert jnp.allclose(hN, hN_ref, atol=2e-3, rtol=2e-2)
    assert jnp.allclose(cN, cN_ref, atol=2e-3, rtol=2e-2)

    print("KERNEL_OK")
</pallas_src>

<mosaic_0001>
module attributes {stable_mosaic.version = 11 : i64} {
  func.func @_lstm_layer_kernel(%arg0: i32, %arg1: i32, %arg2: memref<8x8x128xbf16, #tpu.memory_space<vmem>>, %arg3: memref<128x512xbf16, #tpu.memory_space<vmem>>, %arg4: memref<128x512xbf16, #tpu.memory_space<vmem>>, %arg5: memref<1x512xf32, #tpu.memory_space<vmem>>, %arg6: memref<8x128xf32, #tpu.memory_space<vmem>>, %arg7: memref<8x128xf32, #tpu.memory_space<vmem>>, %arg8: memref<8x8x128xbf16, #tpu.memory_space<vmem>>, %arg9: memref<8x128xf32, #tpu.memory_space<vmem>>, %arg10: memref<8x128xf32, #tpu.memory_space<vmem>>, %arg11: memref<64x512xf32, #tpu.memory_space<vmem>>) attributes {dimension_semantics = [#tpu.dimension_semantics<parallel>, #tpu.dimension_semantics<arbitrary>], iteration_bounds = array<i64: 1, 1>, scalar_prefetch = 0 : i64, scratch_operands = 1 : i64, tpu.core_type = #tpu.core_type<tc>, window_params = [{transform_indices = @transform_0, window_bounds = array<i64: 8, 8, 128>}, {pipeline_mode = #tpu.pipeline_mode<synchronous>, transform_indices = @transform_1, window_bounds = array<i64: 128, 512>}, {pipeline_mode = #tpu.pipeline_mode<synchronous>, transform_indices = @transform_2, window_bounds = array<i64: 128, 512>}, {pipeline_mode = #tpu.pipeline_mode<synchronous>, transform_indices = @transform_3, window_bounds = array<i64: 1, 512>}, {transform_indices = @transform_4, window_bounds = array<i64: 8, 128>}, {transform_indices = @transform_5, window_bounds = array<i64: 8, 128>}, {transform_indices = @transform_6, window_bounds = array<i64: 8, 8, 128>}, {transform_indices = @transform_7, window_bounds = array<i64: 8, 128>}, {transform_indices = @transform_8, window_bounds = array<i64: 8, 128>}]} {
    %c0_i32 = arith.constant 0 : i32
    %0 = arith.cmpi eq, %arg1, %c0_i32 : i32
    %1 = arith.extui %0 : i1 to i32
    %c0_i32_0 = arith.constant 0 : i32
    %2 = arith.cmpi ne, %1, %c0_i32_0 : i32
    scf.if %2 {
      %c0_132 = arith.constant 0 : index
      %c0_133 = arith.constant 0 : index
      %360 = vector.load %arg6[%c0_132, %c0_133] : memref<8x128xf32, #tpu.memory_space<vmem>>, vector<8x128xf32>
      %c0_134 = arith.constant 0 : index
      %c0_135 = arith.constant 0 : index
      %361 = vector.load %arg9[%c0_134, %c0_135] : memref<8x128xf32, #tpu.memory_space<vmem>>, vector<8x128xf32>
      tpu.vector_store %arg9[%c0_134, %c0_135], %360 {strides = array<i32>} : memref<8x128xf32, #tpu.memory_space<vmem>>, vector<8x128xf32>,
      %c0_136 = arith.constant 0 : index
      %c0_137 = arith.constant 0 : index
      %362 = vector.load %arg7[%c0_136, %c0_137] : memref<8x128xf32, #tpu.memory_space<vmem>>, vector<8x128xf32>
      %c0_138 = arith.constant 0 : index
      %c0_139 = arith.constant 0 : index
      %363 = vector.load %arg10[%c0_138, %c0_139] : memref<8x128xf32, #tpu.memory_space<vmem>>, vector<8x128xf32>
      tpu.vector_store %arg10[%c0_138, %c0_139], %362 {strides = array<i32>} : memref<8x128xf32, #tpu.memory_space<vmem>>, vector<8x128xf32>,
    } else {
    }
    %c0 = arith.constant 0 : index
    %c0_1 = arith.constant 0 : index
    %c0_2 = arith.constant 0 : index
    %3 = vector.load %arg2[%c0, %c0_1, %c0_2] : memref<8x8x128xbf16, #tpu.memory_space<vmem>>, vector<8x8x128xbf16>
    %4 = vector.shape_cast %3 : vector<8x8x128xbf16> to vector<64x128xbf16>
    %c0_3 = arith.constant 0 : index
    %c0_4 = arith.constant 0 : index
    %5 = vector.load %arg3[%c0_3, %c0_4] : memref<128x512xbf16, #tpu.memory_space<vmem>>, vector<128x512xbf16>
    %cst = arith.constant dense<0.000000e+00> : vector<64x512xf32>
    %6 = tpu.matmul %4, %5, %cst {dimension_numbers = #tpu.dot_dimension_numbers<[1], [0], [0], [1], [0, 0, 1, 1], [], []>} : vector<64x128xbf16>, vector<128x512xbf16>, vector<64x512xf32> -> vector<64x512xf32>
    %c0_5 = arith.constant 0 : index
    %c0_6 = arith.constant 0 : index
    %7 = vector.load %arg5[%c0_5, %c0_6] : memref<1x512xf32, #tpu.memory_space<vmem>>, vector<1x512xf32>
    %8 = vector.broadcast %7 : vector<1x512xf32> to vector<64x512xf32>
    %9 = arith.addf %6, %8 : vector<64x512xf32>
    %c0_7 = arith.constant 0 : index
    %c0_8 = arith.constant 0 : index
    %10 = vector.load %arg11[%c0_7, %c0_8] : memref<64x512xf32, #tpu.memory_space<vmem>>, vector<64x512xf32>
    tpu.vector_store %arg11[%c0_7, %c0_8], %9 {strides = array<i32>} : memref<64x512xf32, #tpu.memory_space<vmem>>, vector<64x512xf32>,
    %c0_9 = arith.constant 0 : index
    %c0_10 = arith.constant 0 : index
    %11 = vector.load %arg4[%c0_9, %c0_10] : memref<128x512xbf16, #tpu.memory_space<vmem>>, vector<128x512xbf16>
    %c0_11 = arith.constant 0 : index
    %c0_12 = arith.constant 0 : index
    %12 = vector.load %arg9[%c0_11, %c0_12] : memref<8x128xf32, #tpu.memory_space<vmem>>, vector<8x128xf32>
    %c0_13 = arith.constant 0 : index
    %c0_14 = arith.constant 0 : index
    %13 = vector.load %arg10[%c0_13, %c0_14] : memref<8x128xf32, #tpu.memory_space<vmem>>, vector<8x128xf32>
    %c0_i32_15 = arith.constant 0 : i32
    %c8_i32 = arith.constant 8 : i32
    %14 = arith.muli %c0_i32_15, %c8_i32 : i32
    %15 = tpu.assume_multiple %14, 8 : i32
    %16 = arith.index_cast %15 : i32 to index
    %c0_16 = arith.constant 0 : index
    %17 = vector.load %arg11[%16, %c0_16] : memref<64x512xf32, #tpu.memory_space<vmem>>, vector<8x512xf32>
    %18 = arith.truncf %12 : vector<8x128xf32> to vector<8x128xbf16>
    %cst_17 = arith.constant dense<0.000000e+00> : vector<8x512xf32>
    %19 = tpu.matmul %18, %11, %cst_17 {dimension_numbers = #tpu.dot_dimension_numbers<[1], [0], [0], [1], [0, 0, 1, 1], [], []>} : vector<8x128xbf16>, vector<128x512xbf16>, vector<8x512xf32> -> vector<8x512xf32>
    %20 = arith.addf %17, %19 : vector<8x512xf32>
    %21 = vector.extract_strided_slice %20 {offsets = [0, 0], sizes = [8, 128], strides = [1, 1]} : vector<8x512xf32> to vector<8x128xf32>
    %cst_18 = arith.constant 5.000000e-01 : f32
    %22 = vector.broadcast %cst_18 : f32 to vector<8x128xf32>
    %23 = arith.mulf %22, %21 : vector<8x128xf32>
    %24 = math.tanh %23 : vector<8x128xf32>
    %cst_19 = arith.constant 5.000000e-01 : f32
    %25 = vector.broadcast %cst_19 : f32 to vector<8x128xf32>
    %26 = arith.mulf %25, %24 : vector<8x128xf32>
    %cst_20 = arith.constant 5.000000e-01 : f32
    %27 = vector.broadcast %cst_20 : f32 to vector<8x128xf32>
    %28 = arith.addf %26, %27 : vector<8x128xf32>
    %29 = vector.extract_strided_slice %20 {offsets = [0, 128], sizes = [8, 128], strides = [1, 1]} : vector<8x512xf32> to vector<8x128xf32>
    %cst_21 = arith.constant 5.000000e-01 : f32
    %30 = vector.broadcast %cst_21 : f32 to vector<8x128xf32>
    %31 = arith.mulf %30, %29 : vector<8x128xf32>
    %32 = math.tanh %31 : vector<8x128xf32>
    %cst_22 = arith.constant 5.000000e-01 : f32
    %33 = vector.broadcast %cst_22 : f32 to vector<8x128xf32>
    %34 = arith.mulf %33, %32 : vector<8x128xf32>
    %cst_23 = arith.constant 5.000000e-01 : f32
    %35 = vector.broadcast %cst_23 : f32 to vector<8x128xf32>
    %36 = arith.addf %34, %35 : vector<8x128xf32>
    %37 = vector.extract_strided_slice %20 {offsets = [0, 256], sizes = [8, 128], strides = [1, 1]} : vector<8x512xf32> to vector<8x128xf32>
    %38 = math.tanh %37 : vector<8x128xf32>
    %39 = vector.extract_strided_slice %20 {offsets = [0, 384], sizes = [8, 128], strides = [1, 1]} : vector<8x512xf32> to vector<8x128xf32>
    %cst_24 = arith.constant 5.000000e-01 : f32
    %40 = vector.broadcast %cst_24 : f32 to vector<8x128xf32>
    %41 = arith.mulf %40, %39 : vector<8x128xf32>
    %42 = math.tanh %41 : vector<8x128xf32>
    %cst_25 = arith.constant 5.000000e-01 : f32
    %43 = vector.broadcast %cst_25 : f32 to vector<8x128xf32>
    %44 = arith.mulf %43, %42 : vector<8x128xf32>
    %cst_26 = arith.constant 5.000000e-01 : f32
    %45 = vector.broadcast %cst_26 : f32 to vector<8x128xf32>
    %46 = arith.addf %44, %45 : vector<8x128xf32>
    %47 = arith.mulf %36, %13 : vector<8x128xf32>
    %48 = arith.mulf %28, %38 : vector<8x128xf32>
    %49 = arith.addf %47, %48 : vector<8x128xf32>
    %50 = math.tanh %49 : vector<8x128xf32>
    %51 = arith.mulf %46, %50 : vector<8x128xf32>
    %52 = arith.truncf %51 : vector<8x128xf32> to vector<8x128xbf16>
    %53 = arith.index_cast %c0_i32_15 : i32 to index
    %c0_27 = arith.constant 0 : index
    %c0_28 = arith.constant 0 : index
    %54 = vector.load %arg8[%53, %c0_27, %c0_28] : memref<8x8x128xbf16, #tpu.memory_space<vmem>>, vector<1x8x128xbf16>
    %55 = vector.shape_cast %54 : vector<1x8x128xbf16> to vector<8x128xbf16>
    %56 = vector.shape_cast %52 : vector<8x128xbf16> to vector<1x8x128xbf16>
    tpu.vector_store %arg8[%53, %c0_27, %c0_28], %56 {strides = array<i32>} : memref<8x8x128xbf16, #tpu.memory_space<vmem>>, vector<1x8x128xbf16>,
    %c1_i32 = arith.constant 1 : i32
    %c8_i32_29 = arith.constant 8 : i32
    %57 = arith.muli %c1_i32, %c8_i32_29 : i32
    %58 = tpu.assume_multiple %57, 8 : i32
    %59 = arith.index_cast %58 : i32 to index
    %c0_30 = arith.constant 0 : index
    %60 = vector.load %arg11[%59, %c0_30] : memref<64x512xf32, #tpu.memory_space<vmem>>, vector<8x512xf32>
    %61 = arith.truncf %51 : vector<8x128xf32> to vector<8x128xbf16>
    %cst_31 = arith.constant dense<0.000000e+00> : vector<8x512xf32>
    %62 = tpu.matmul %61, %11, %cst_31 {dimension_numbers = #tpu.dot_dimension_numbers<[1], [0], [0], [1], [0, 0, 1, 1], [], []>} : vector<8x128xbf16>, vector<128x512xbf16>, vector<8x512xf32> -> vector<8x512xf32>
    %63 = arith.addf %60, %62 : vector<8x512xf32>
    %64 = vector.extract_strided_slice %63 {offsets = [0, 0], sizes = [8, 128], strides = [1, 1]} : vector<8x512xf32> to vector<8x128xf32>
    %cst_32 = arith.constant 5.000000e-01 : f32
    %65 = vector.broadcast %cst_32 : f32 to vector<8x128xf32>
    %66 = arith.mulf %65, %64 : vector<8x128xf32>
    %67 = math.tanh %66 : vector<8x128xf32>
    %cst_33 = arith.constant 5.000000e-01 : f32
    %68 = vector.broadcast %cst_33 : f32 to vector<8x128xf32>
    %69 = arith.mulf %68, %67 : vector<8x128xf32>
    %cst_34 = arith.constant 5.000000e-01 : f32
    %70 = vector.broadcast %cst_34 : f32 to vector<8x128xf32>
    %71 = arith.addf %69, %70 : vector<8x128xf32>
    %72 = vector.extract_strided_slice %63 {offsets = [0, 128], sizes = [8, 128], strides = [1, 1]} : vector<8x512xf32> to vector<8x128xf32>
    %cst_35 = arith.constant 5.000000e-01 : f32
    %73 = vector.broadcast %cst_35 : f32 to vector<8x128xf32>
    %74 = arith.mulf %73, %72 : vector<8x128xf32>
    %75 = math.tanh %74 : vector<8x128xf32>
    %cst_36 = arith.constant 5.000000e-01 : f32
    %76 = vector.broadcast %cst_36 : f32 to vector<8x128xf32>
    %77 = arith.mulf %76, %75 : vector<8x128xf32>
    %cst_37 = arith.constant 5.000000e-01 : f32
    %78 = vector.broadcast %cst_37 : f32 to vector<8x128xf32>
    %79 = arith.addf %77, %78 : vector<8x128xf32>
    %80 = vector.extract_strided_slice %63 {offsets = [0, 256], sizes = [8, 128], strides = [1, 1]} : vector<8x512xf32> to vector<8x128xf32>
    %81 = math.tanh %80 : vector<8x128xf32>
    %82 = vector.extract_strided_slice %63 {offsets = [0, 384], sizes = [8, 128], strides = [1, 1]} : vector<8x512xf32> to vector<8x128xf32>
    %cst_38 = arith.constant 5.000000e-01 : f32
    %83 = vector.broadcast %cst_38 : f32 to vector<8x128xf32>
    %84 = arith.mulf %83, %82 : vector<8x128xf32>
    %85 = math.tanh %84 : vector<8x128xf32>
    %cst_39 = arith.constant 5.000000e-01 : f32
    %86 = vector.broadcast %cst_39 : f32 to vector<8x128xf32>
    %87 = arith.mulf %86, %85 : vector<8x128xf32>
    %cst_40 = arith.constant 5.000000e-01 : f32
    %88 = vector.broadcast %cst_40 : f32 to vector<8x128xf32>
    %89 = arith.addf %87, %88 : vector<8x128xf32>
    %90 = arith.mulf %79, %49 : vector<8x128xf32>
    %91 = arith.mulf %71, %81 : vector<8x128xf32>
    %92 = arith.addf %90, %91 : vector<8x128xf32>
    %93 = math.tanh %92 : vector<8x128xf32>
    %94 = arith.mulf %89, %93 : vector<8x128xf32>
    %95 = arith.truncf %94 : vector<8x128xf32> to vector<8x128xbf16>
    %96 = arith.index_cast %c1_i32 : i32 to index
    %c0_41 = arith.constant 0 : index
    %c0_42 = arith.constant 0 : index
    %97 = vector.load %arg8[%96, %c0_41, %c0_42] : memref<8x8x128xbf16, #tpu.memory_space<vmem>>, vector<1x8x128xbf16>
    %98 = vector.shape_cast %97 : vector<1x8x128xbf16> to vector<8x128xbf16>
    %99 = vector.shape_cast %95 : vector<8x128xbf16> to vector<1x8x128xbf16>
    tpu.vector_store %arg8[%96, %c0_41, %c0_42], %99 {strides = array<i32>} : memref<8x8x128xbf16, #tpu.memory_space<vmem>>, vector<1x8x128xbf16>,
    %c2_i32 = arith.constant 2 : i32
    %c8_i32_43 = arith.constant 8 : i32
    %100 = arith.muli %c2_i32, %c8_i32_43 : i32
    %101 = tpu.assume_multiple %100, 8 : i32
    %102 = arith.index_cast %101 : i32 to index
    %c0_44 = arith.constant 0 : index
    %103 = vector.load %arg11[%102, %c0_44] : memref<64x512xf32, #tpu.memory_space<vmem>>, vector<8x512xf32>
    %104 = arith.truncf %94 : vector<8x128xf32> to vector<8x128xbf16>
    %cst_45 = arith.constant dense<0.000000e+00> : vector<8x512xf32>
    %105 = tpu.matmul %104, %11, %cst_45 {dimension_numbers = #tpu.dot_dimension_numbers<[1], [0], [0], [1], [0, 0, 1, 1], [], []>} : vector<8x128xbf16>, vector<128x512xbf16>, vector<8x512xf32> -> vector<8x512xf32>
    %106 = arith.addf %103, %105 : vector<8x512xf32>
    %107 = vector.extract_strided_slice %106 {offsets = [0, 0], sizes = [8, 128], strides = [1, 1]} : vector<8x512xf32> to vector<8x128xf32>
    %cst_46 = arith.constant 5.000000e-01 : f32
    %108 = vector.broadcast %cst_46 : f32 to vector<8x128xf32>
    %109 = arith.mulf %108, %107 : vector<8x128xf32>
    %110 = math.tanh %109 : vector<8x128xf32>
    %cst_47 = arith.constant 5.000000e-01 : f32
    %111 = vector.broadcast %cst_47 : f32 to vector<8x128xf32>
    %112 = arith.mulf %111, %110 : vector<8x128xf32>
    %cst_48 = arith.constant 5.000000e-01 : f32
    %113 = vector.broadcast %cst_48 : f32 to vector<8x128xf32>
    %114 = arith.addf %112, %113 : vector<8x128xf32>
    %115 = vector.extract_strided_slice %106 {offsets = [0, 128], sizes = [8, 128], strides = [1, 1]} : vector<8x512xf32> to vector<8x128xf32>
    %cst_49 = arith.constant 5.000000e-01 : f32
    %116 = vector.broadcast %cst_49 : f32 to vector<8x128xf32>
    %117 = arith.mulf %116, %115 : vector<8x128xf32>
    %118 = math.tanh %117 : vector<8x128xf32>
    %cst_50 = arith.constant 5.000000e-01 : f32
    %119 = vector.broadcast %cst_50 : f32 to vector<8x128xf32>
    %120 = arith.mulf %119, %118 : vector<8x128xf32>
    %cst_51 = arith.constant 5.000000e-01 : f32
    %121 = vector.broadcast %cst_51 : f32 to vector<8x128xf32>
    %122 = arith.addf %120, %121 : vector<8x128xf32>
    %123 = vector.extract_strided_slice %106 {offsets = [0, 256], sizes = [8, 128], strides = [1, 1]} : vector<8x512xf32> to vector<8x128xf32>
    %124 = math.tanh %123 : vector<8x128xf32>
    %125 = vector.extract_strided_slice %106 {offsets = [0, 384], sizes = [8, 128], strides = [1, 1]} : vector<8x512xf32> to vector<8x128xf32>
    %cst_52 = arith.constant 5.000000e-01 : f32
    %126 = vector.broadcast %cst_52 : f32 to vector<8x128xf32>
    %127 = arith.mulf %126, %125 : vector<8x128xf32>
    %128 = math.tanh %127 : vector<8x128xf32>
    %cst_53 = arith.constant 5.000000e-01 : f32
    %129 = vector.broadcast %cst_53 : f32 to vector<8x128xf32>
    %130 = arith.mulf %129, %128 : vector<8x128xf32>
    %cst_54 = arith.constant 5.000000e-01 : f32
    %131 = vector.broadcast %cst_54 : f32 to vector<8x128xf32>
    %132 = arith.addf %130, %131 : vector<8x128xf32>
    %133 = arith.mulf %122, %92 : vector<8x128xf32>
    %134 = arith.mulf %114, %124 : vector<8x128xf32>
    %135 = arith.addf %133, %134 : vector<8x128xf32>
    %136 = math.tanh %135 : vector<8x128xf32>
    %137 = arith.mulf %132, %136 : vector<8x128xf32>
    %138 = arith.truncf %137 : vector<8x128xf32> to vector<8x128xbf16>
    %139 = arith.index_cast %c2_i32 : i32 to index
    %c0_55 = arith.constant 0 : index
    %c0_56 = arith.constant 0 : index
    %140 = vector.load %arg8[%139, %c0_55, %c0_56] : memref<8x8x128xbf16, #tpu.memory_space<vmem>>, vector<1x8x128xbf16>
    %141 = vector.shape_cast %140 : vector<1x8x128xbf16> to vector<8x128xbf16>
    %142 = vector.shape_cast %138 : vector<8x128xbf16> to vector<1x8x128xbf16>
    tpu.vector_store %arg8[%139, %c0_55, %c0_56], %142 {strides = array<i32>} : memref<8x8x128xbf16, #tpu.memory_space<vmem>>, vector<1x8x128xbf16>,
    %c3_i32 = arith.constant 3 : i32
    %c8_i32_57 = arith.constant 8 : i32
    %143 = arith.muli %c3_i32, %c8_i32_57 : i32
    %144 = tpu.assume_multiple %143, 8 : i32
    %145 = arith.index_cast %144 : i32 to index
    %c0_58 = arith.constant 0 : index
    %146 = vector.load %arg11[%145, %c0_58] : memref<64x512xf32, #tpu.memory_space<vmem>>, vector<8x512xf32>
    %147 = arith.truncf %137 : vector<8x128xf32> to vector<8x128xbf16>
    %cst_59 = arith.constant dense<0.000000e+00> : vector<8x512xf32>
    %148 = tpu.matmul %147, %11, %cst_59 {dimension_numbers = #tpu.dot_dimension_numbers<[1], [0], [0], [1], [0, 0, 1, 1], [], []>} : vector<8x128xbf16>, vector<128x512xbf16>, vector<8x512xf32> -> vector<8x512xf32>
    %149 = arith.addf %146, %148 : vector<8x512xf32>
    %150 = vector.extract_strided_slice %149 {offsets = [0, 0], sizes = [8, 128], strides = [1, 1]} : vector<8x512xf32> to vector<8x128xf32>
    %cst_60 = arith.constant 5.000000e-01 : f32
    %151 = vector.broadcast %cst_60 : f32 to vector<8x128xf32>
    %152 = arith.mulf %151, %150 : vector<8x128xf32>
    %153 = math.tanh %152 : vector<8x128xf32>
    %cst_61 = arith.constant 5.000000e-01 : f32
    %154 = vector.broadcast %cst_61 : f32 to vector<8x128xf32>
    %155 = arith.mulf %154, %153 : vector<8x128xf32>
    %cst_62 = arith.constant 5.000000e-01 : f32
    %156 = vector.broadcast %cst_62 : f32 to vector<8x128xf32>
    %157 = arith.addf %155, %156 : vector<8x128xf32>
    %158 = vector.extract_strided_slice %149 {offsets = [0, 128], sizes = [8, 128], strides = [1, 1]} : vector<8x512xf32> to vector<8x128xf32>
    %cst_63 = arith.constant 5.000000e-01 : f32
    %159 = vector.broadcast %cst_63 : f32 to vector<8x128xf32>
    %160 = arith.mulf %159, %158 : vector<8x128xf32>
    %161 = math.tanh %160 : vector<8x128xf32>
    %cst_64 = arith.constant 5.000000e-01 : f32
    %162 = vector.broadcast %cst_64 : f32 to vector<8x128xf32>
    %163 = arith.mulf %162, %161 : vector<8x128xf32>
    %cst_65 = arith.constant 5.000000e-01 : f32
    %164 = vector.broadcast %cst_65 : f32 to vector<8x128xf32>
    %165 = arith.addf %163, %164 : vector<8x128xf32>
    %166 = vector.extract_strided_slice %149 {offsets = [0, 256], sizes = [8, 128], strides = [1, 1]} : vector<8x512xf32> to vector<8x128xf32>
    %167 = math.tanh %166 : vector<8x128xf32>
    %168 = vector.extract_strided_slice %149 {offsets = [0, 384], sizes = [8, 128], strides = [1, 1]} : vector<8x512xf32> to vector<8x128xf32>
    %cst_66 = arith.constant 5.000000e-01 : f32
    %169 = vector.broadcast %cst_66 : f32 to vector<8x128xf32>
    %170 = arith.mulf %169, %168 : vector<8x128xf32>
    %171 = math.tanh %170 : vector<8x128xf32>
    %cst_67 = arith.constant 5.000000e-01 : f32
    %172 = vector.broadcast %cst_67 : f32 to vector<8x128xf32>
    %173 = arith.mulf %172, %171 : vector<8x128xf32>
    %cst_68 = arith.constant 5.000000e-01 : f32
    %174 = vector.broadcast %cst_68 : f32 to vector<8x128xf32>
    %175 = arith.addf %173, %174 : vector<8x128xf32>
    %176 = arith.mulf %165, %135 : vector<8x128xf32>
    %177 = arith.mulf %157, %167 : vector<8x128xf32>
    %178 = arith.addf %176, %177 : vector<8x128xf32>
    %179 = math.tanh %178 : vector<8x128xf32>
    %180 = arith.mulf %175, %179 : vector<8x128xf32>
    %181 = arith.truncf %180 : vector<8x128xf32> to vector<8x128xbf16>
    %182 = arith.index_cast %c3_i32 : i32 to index
    %c0_69 = arith.constant 0 : index
    %c0_70 = arith.constant 0 : index
    %183 = vector.load %arg8[%182, %c0_69, %c0_70] : memref<8x8x128xbf16, #tpu.memory_space<vmem>>, vector<1x8x128xbf16>
    %184 = vector.shape_cast %183 : vector<1x8x128xbf16> to vector<8x128xbf16>
    %185 = vector.shape_cast %181 : vector<8x128xbf16> to vector<1x8x128xbf16>
    tpu.vector_store %arg8[%182, %c0_69, %c0_70], %185 {strides = array<i32>} : memref<8x8x128xbf16, #tpu.memory_space<vmem>>, vector<1x8x128xbf16>,
    %c4_i32 = arith.constant 4 : i32
    %c8_i32_71 = arith.constant 8 : i32
    %186 = arith.muli %c4_i32, %c8_i32_71 : i32
    %187 = tpu.assume_multiple %186, 8 : i32
    %188 = arith.index_cast %187 : i32 to index
    %c0_72 = arith.constant 0 : index
    %189 = vector.load %arg11[%188, %c0_72] : memref<64x512xf32, #tpu.memory_space<vmem>>, vector<8x512xf32>
    %190 = arith.truncf %180 : vector<8x128xf32> to vector<8x128xbf16>
    %cst_73 = arith.constant dense<0.000000e+00> : vector<8x512xf32>
    %191 = tpu.matmul %190, %11, %cst_73 {dimension_numbers = #tpu.dot_dimension_numbers<[1], [0], [0], [1], [0, 0, 1, 1], [], []>} : vector<8x128xbf16>, vector<128x512xbf16>, vector<8x512xf32> -> vector<8x512xf32>
    %192 = arith.addf %189, %191 : vector<8x512xf32>
    %193 = vector.extract_strided_slice %192 {offsets = [0, 0], sizes = [8, 128], strides = [1, 1]} : vector<8x512xf32> to vector<8x128xf32>
    %cst_74 = arith.constant 5.000000e-01 : f32
    %194 = vector.broadcast %cst_74 : f32 to vector<8x128xf32>
    %195 = arith.mulf %194, %193 : vector<8x128xf32>
    %196 = math.tanh %195 : vector<8x128xf32>
    %cst_75 = arith.constant 5.000000e-01 : f32
    %197 = vector.broadcast %cst_75 : f32 to vector<8x128xf32>
    %198 = arith.mulf %197, %196 : vector<8x128xf32>
    %cst_76 = arith.constant 5.000000e-01 : f32
    %199 = vector.broadcast %cst_76 : f32 to vector<8x128xf32>
    %200 = arith.addf %198, %199 : vector<8x128xf32>
    %201 = vector.extract_strided_slice %192 {offsets = [0, 128], sizes = [8, 128], strides = [1, 1]} : vector<8x512xf32> to vector<8x128xf32>
    %cst_77 = arith.constant 5.000000e-01 : f32
    %202 = vector.broadcast %cst_77 : f32 to vector<8x128xf32>
    %203 = arith.mulf %202, %201 : vector<8x128xf32>
    %204 = math.tanh %203 : vector<8x128xf32>
    %cst_78 = arith.constant 5.000000e-01 : f32
    %205 = vector.broadcast %cst_78 : f32 to vector<8x128xf32>
    %206 = arith.mulf %205, %204 : vector<8x128xf32>
    %cst_79 = arith.constant 5.000000e-01 : f32
    %207 = vector.broadcast %cst_79 : f32 to vector<8x128xf32>
    %208 = arith.addf %206, %207 : vector<8x128xf32>
    %209 = vector.extract_strided_slice %192 {offsets = [0, 256], sizes = [8, 128], strides = [1, 1]} : vector<8x512xf32> to vector<8x128xf32>
    %210 = math.tanh %209 : vector<8x128xf32>
    %211 = vector.extract_strided_slice %192 {offsets = [0, 384], sizes = [8, 128], strides = [1, 1]} : vector<8x512xf32> to vector<8x128xf32>
    %cst_80 = arith.constant 5.000000e-01 : f32
    %212 = vector.broadcast %cst_80 : f32 to vector<8x128xf32>
    %213 = arith.mulf %212, %211 : vector<8x128xf32>
    %214 = math.tanh %213 : vector<8x128xf32>
    %cst_81 = arith.constant 5.000000e-01 : f32
    %215 = vector.broadcast %cst_81 : f32 to vector<8x128xf32>
    %216 = arith.mulf %215, %214 : vector<8x128xf32>
    %cst_82 = arith.constant 5.000000e-01 : f32
    %217 = vector.broadcast %cst_82 : f32 to vector<8x128xf32>
    %218 = arith.addf %216, %217 : vector<8x128xf32>
    %219 = arith.mulf %208, %178 : vector<8x128xf32>
    %220 = arith.mulf %200, %210 : vector<8x128xf32>
    %221 = arith.addf %219, %220 : vector<8x128xf32>
    %222 = math.tanh %221 : vector<8x128xf32>
    %223 = arith.mulf %218, %222 : vector<8x128xf32>
    %224 = arith.truncf %223 : vector<8x128xf32> to vector<8x128xbf16>
    %225 = arith.index_cast %c4_i32 : i32 to index
    %c0_83 = arith.constant 0 : index
    %c0_84 = arith.constant 0 : index
    %226 = vector.load %arg8[%225, %c0_83, %c0_84] : memref<8x8x128xbf16, #tpu.memory_space<vmem>>, vector<1x8x128xbf16>
    %227 = vector.shape_cast %226 : vector<1x8x128xbf16> to vector<8x128xbf16>
    %228 = vector.shape_cast %224 : vector<8x128xbf16> to vector<1x8x128xbf16>
    tpu.vector_store %arg8[%225, %c0_83, %c0_84], %228 {strides = array<i32>} : memref<8x8x128xbf16, #tpu.memory_space<vmem>>, vector<1x8x128xbf16>,
    %c5_i32 = arith.constant 5 : i32
    %c8_i32_85 = arith.constant 8 : i32
    %229 = arith.muli %c5_i32, %c8_i32_85 : i32
    %230 = tpu.assume_multiple %229, 8 : i32
    %231 = arith.index_cast %230 : i32 to index
    %c0_86 = arith.constant 0 : index
    %232 = vector.load %arg11[%231, %c0_86] : memref<64x512xf32, #tpu.memory_space<vmem>>, vector<8x512xf32>
    %233 = arith.truncf %223 : vector<8x128xf32> to vector<8x128xbf16>
    %cst_87 = arith.constant dense<0.000000e+00> : vector<8x512xf32>
    %234 = tpu.matmul %233, %11, %cst_87 {dimension_numbers = #tpu.dot_dimension_numbers<[1], [0], [0], [1], [0, 0, 1, 1], [], []>} : vector<8x128xbf16>, vector<128x512xbf16>, vector<8x512xf32> -> vector<8x512xf32>
    %235 = arith.addf %232, %234 : vector<8x512xf32>
    %236 = vector.extract_strided_slice %235 {offsets = [0, 0], sizes = [8, 128], strides = [1, 1]} : vector<8x512xf32> to vector<8x128xf32>
    %cst_88 = arith.constant 5.000000e-01 : f32
    %237 = vector.broadcast %cst_88 : f32 to vector<8x128xf32>
    %238 = arith.mulf %237, %236 : vector<8x128xf32>
    %239 = math.tanh %238 : vector<8x128xf32>
    %cst_89 = arith.constant 5.000000e-01 : f32
    %240 = vector.broadcast %cst_89 : f32 to vector<8x128xf32>
    %241 = arith.mulf %240, %239 : vector<8x128xf32>
    %cst_90 = arith.constant 5.000000e-01 : f32
    %242 = vector.broadcast %cst_90 : f32 to vector<8x128xf32>
    %243 = arith.addf %241, %242 : vector<8x128xf32>
    %244 = vector.extract_strided_slice %235 {offsets = [0, 128], sizes = [8, 128], strides = [1, 1]} : vector<8x512xf32> to vector<8x128xf32>
    %cst_91 = arith.constant 5.000000e-01 : f32
    %245 = vector.broadcast %cst_91 : f32 to vector<8x128xf32>
    %246 = arith.mulf %245, %244 : vector<8x128xf32>
    %247 = math.tanh %246 : vector<8x128xf32>
    %cst_92 = arith.constant 5.000000e-01 : f32
    %248 = vector.broadcast %cst_92 : f32 to vector<8x128xf32>
    %249 = arith.mulf %248, %247 : vector<8x128xf32>
    %cst_93 = arith.constant 5.000000e-01 : f32
    %250 = vector.broadcast %cst_93 : f32 to vector<8x128xf32>
    %251 = arith.addf %249, %250 : vector<8x128xf32>
    %252 = vector.extract_strided_slice %235 {offsets = [0, 256], sizes = [8, 128], strides = [1, 1]} : vector<8x512xf32> to vector<8x128xf32>
    %253 = math.tanh %252 : vector<8x128xf32>
    %254 = vector.extract_strided_slice %235 {offsets = [0, 384], sizes = [8, 128], strides = [1, 1]} : vector<8x512xf32> to vector<8x128xf32>
    %cst_94 = arith.constant 5.000000e-01 : f32
    %255 = vector.broadcast %cst_94 : f32 to vector<8x128xf32>
    %256 = arith.mulf %255, %254 : vector<8x128xf32>
    %257 = math.tanh %256 : vector<8x128xf32>
    %cst_95 = arith.constant 5.000000e-01 : f32
    %258 = vector.broadcast %cst_95 : f32 to vector<8x128xf32>
    %259 = arith.mulf %258, %257 : vector<8x128xf32>
    %cst_96 = arith.constant 5.000000e-01 : f32
    %260 = vector.broadcast %cst_96 : f32 to vector<8x128xf32>
    %261 = arith.addf %259, %260 : vector<8x128xf32>
    %262 = arith.mulf %251, %221 : vector<8x128xf32>
    %263 = arith.mulf %243, %253 : vector<8x128xf32>
    %264 = arith.addf %262, %263 : vector<8x128xf32>
    %265 = math.tanh %264 : vector<8x128xf32>
    %266 = arith.mulf %261, %265 : vector<8x128xf32>
    %267 = arith.truncf %266 : vector<8x128xf32> to vector<8x128xbf16>
    %268 = arith.index_cast %c5_i32 : i32 to index
    %c0_97 = arith.constant 0 : index
    %c0_98 = arith.constant 0 : index
    %269 = vector.load %arg8[%268, %c0_97, %c0_98] : memref<8x8x128xbf16, #tpu.memory_space<vmem>>, vector<1x8x128xbf16>
    %270 = vector.shape_cast %269 : vector<1x8x128xbf16> to vector<8x128xbf16>
    %271 = vector.shape_cast %267 : vector<8x128xbf16> to vector<1x8x128xbf16>
    tpu.vector_store %arg8[%268, %c0_97, %c0_98], %271 {strides = array<i32>} : memref<8x8x128xbf16, #tpu.memory_space<vmem>>, vector<1x8x128xbf16>,
    %c6_i32 = arith.constant 6 : i32
    %c8_i32_99 = arith.constant 8 : i32
    %272 = arith.muli %c6_i32, %c8_i32_99 : i32
    %273 = tpu.assume_multiple %272, 8 : i32
    %274 = arith.index_cast %273 : i32 to index
    %c0_100 = arith.constant 0 : index
    %275 = vector.load %arg11[%274, %c0_100] : memref<64x512xf32, #tpu.memory_space<vmem>>, vector<8x512xf32>
    %276 = arith.truncf %266 : vector<8x128xf32> to vector<8x128xbf16>
    %cst_101 = arith.constant dense<0.000000e+00> : vector<8x512xf32>
    %277 = tpu.matmul %276, %11, %cst_101 {dimension_numbers = #tpu.dot_dimension_numbers<[1], [0], [0], [1], [0, 0, 1, 1], [], []>} : vector<8x128xbf16>, vector<128x512xbf16>, vector<8x512xf32> -> vector<8x512xf32>
    %278 = arith.addf %275, %277 : vector<8x512xf32>
    %279 = vector.extract_strided_slice %278 {offsets = [0, 0], sizes = [8, 128], strides = [1, 1]} : vector<8x512xf32> to vector<8x128xf32>
    %cst_102 = arith.constant 5.000000e-01 : f32
    %280 = vector.broadcast %cst_102 : f32 to vector<8x128xf32>
    %281 = arith.mulf %280, %279 : vector<8x128xf32>
    %282 = math.tanh %281 : vector<8x128xf32>
    %cst_103 = arith.constant 5.000000e-01 : f32
    %283 = vector.broadcast %cst_103 : f32 to vector<8x128xf32>
    %284 = arith.mulf %283, %282 : vector<8x128xf32>
    %cst_104 = arith.constant 5.000000e-01 : f32
    %285 = vector.broadcast %cst_104 : f32 to vector<8x128xf32>
    %286 = arith.addf %284, %285 : vector<8x128xf32>
    %287 = vector.extract_strided_slice %278 {offsets = [0, 128], sizes = [8, 128], strides = [1, 1]} : vector<8x512xf32> to vector<8x128xf32>
    %cst_105 = arith.constant 5.000000e-01 : f32
    %288 = vector.broadcast %cst_105 : f32 to vector<8x128xf32>
    %289 = arith.mulf %288, %287 : vector<8x128xf32>
    %290 = math.tanh %289 : vector<8x128xf32>
    %cst_106 = arith.constant 5.000000e-01 : f32
    %291 = vector.broadcast %cst_106 : f32 to vector<8x128xf32>
    %292 = arith.mulf %291, %290 : vector<8x128xf32>
    %cst_107 = arith.constant 5.000000e-01 : f32
    %293 = vector.broadcast %cst_107 : f32 to vector<8x128xf32>
    %294 = arith.addf %292, %293 : vector<8x128xf32>
    %295 = vector.extract_strided_slice %278 {offsets = [0, 256], sizes = [8, 128], strides = [1, 1]} : vector<8x512xf32> to vector<8x128xf32>
    %296 = math.tanh %295 : vector<8x128xf32>
    %297 = vector.extract_strided_slice %278 {offsets = [0, 384], sizes = [8, 128], strides = [1, 1]} : vector<8x512xf32> to vector<8x128xf32>
    %cst_108 = arith.constant 5.000000e-01 : f32
    %298 = vector.broadcast %cst_108 : f32 to vector<8x128xf32>
    %299 = arith.mulf %298, %297 : vector<8x128xf32>
    %300 = math.tanh %299 : vector<8x128xf32>
    %cst_109 = arith.constant 5.000000e-01 : f32
    %301 = vector.broadcast %cst_109 : f32 to vector<8x128xf32>
    %302 = arith.mulf %301, %300 : vector<8x128xf32>
    %cst_110 = arith.constant 5.000000e-01 : f32
    %303 = vector.broadcast %cst_110 : f32 to vector<8x128xf32>
    %304 = arith.addf %302, %303 : vector<8x128xf32>
    %305 = arith.mulf %294, %264 : vector<8x128xf32>
    %306 = arith.mulf %286, %296 : vector<8x128xf32>
    %307 = arith.addf %305, %306 : vector<8x128xf32>
    %308 = math.tanh %307 : vector<8x128xf32>
    %309 = arith.mulf %304, %308 : vector<8x128xf32>
    %310 = arith.truncf %309 : vector<8x128xf32> to vector<8x128xbf16>
    %311 = arith.index_cast %c6_i32 : i32 to index
    %c0_111 = arith.constant 0 : index
    %c0_112 = arith.constant 0 : index
    %312 = vector.load %arg8[%311, %c0_111, %c0_112] : memref<8x8x128xbf16, #tpu.memory_space<vmem>>, vector<1x8x128xbf16>
    %313 = vector.shape_cast %312 : vector<1x8x128xbf16> to vector<8x128xbf16>
    %314 = vector.shape_cast %310 : vector<8x128xbf16> to vector<1x8x128xbf16>
    tpu.vector_store %arg8[%311, %c0_111, %c0_112], %314 {strides = array<i32>} : memref<8x8x128xbf16, #tpu.memory_space<vmem>>, vector<1x8x128xbf16>,
    %c7_i32 = arith.constant 7 : i32
    %c8_i32_113 = arith.constant 8 : i32
    %315 = arith.muli %c7_i32, %c8_i32_113 : i32
    %316 = tpu.assume_multiple %315, 8 : i32
    %317 = arith.index_cast %316 : i32 to index
    %c0_114 = arith.constant 0 : index
    %318 = vector.load %arg11[%317, %c0_114] : memref<64x512xf32, #tpu.memory_space<vmem>>, vector<8x512xf32>
    %319 = arith.truncf %309 : vector<8x128xf32> to vector<8x128xbf16>
    %cst_115 = arith.constant dense<0.000000e+00> : vector<8x512xf32>
    %320 = tpu.matmul %319, %11, %cst_115 {dimension_numbers = #tpu.dot_dimension_numbers<[1], [0], [0], [1], [0, 0, 1, 1], [], []>} : vector<8x128xbf16>, vector<128x512xbf16>, vector<8x512xf32> -> vector<8x512xf32>
    %321 = arith.addf %318, %320 : vector<8x512xf32>
    %322 = vector.extract_strided_slice %321 {offsets = [0, 0], sizes = [8, 128], strides = [1, 1]} : vector<8x512xf32> to vector<8x128xf32>
    %cst_116 = arith.constant 5.000000e-01 : f32
    %323 = vector.broadcast %cst_116 : f32 to vector<8x128xf32>
    %324 = arith.mulf %323, %322 : vector<8x128xf32>
    %325 = math.tanh %324 : vector<8x128xf32>
    %cst_117 = arith.constant 5.000000e-01 : f32
    %326 = vector.broadcast %cst_117 : f32 to vector<8x128xf32>
    %327 = arith.mulf %326, %325 : vector<8x128xf32>
    %cst_118 = arith.constant 5.000000e-01 : f32
    %328 = vector.broadcast %cst_118 : f32 to vector<8x128xf32>
    %329 = arith.addf %327, %328 : vector<8x128xf32>
    %330 = vector.extract_strided_slice %321 {offsets = [0, 128], sizes = [8, 128], strides = [1, 1]} : vector<8x512xf32> to vector<8x128xf32>
    %cst_119 = arith.constant 5.000000e-01 : f32
    %331 = vector.broadcast %cst_119 : f32 to vector<8x128xf32>
    %332 = arith.mulf %331, %330 : vector<8x128xf32>
    %333 = math.tanh %332 : vector<8x128xf32>
    %cst_120 = arith.constant 5.000000e-01 : f32
    %334 = vector.broadcast %cst_120 : f32 to vector<8x128xf32>
    %335 = arith.mulf %334, %333 : vector<8x128xf32>
    %cst_121 = arith.constant 5.000000e-01 : f32
    %336 = vector.broadcast %cst_121 : f32 to vector<8x128xf32>
    %337 = arith.addf %335, %336 : vector<8x128xf32>
    %338 = vector.extract_strided_slice %321 {offsets = [0, 256], sizes = [8, 128], strides = [1, 1]} : vector<8x512xf32> to vector<8x128xf32>
    %339 = math.tanh %338 : vector<8x128xf32>
    %340 = vector.extract_strided_slice %321 {offsets = [0, 384], sizes = [8, 128], strides = [1, 1]} : vector<8x512xf32> to vector<8x128xf32>
    %cst_122 = arith.constant 5.000000e-01 : f32
    %341 = vector.broadcast %cst_122 : f32 to vector<8x128xf32>
    %342 = arith.mulf %341, %340 : vector<8x128xf32>
    %343 = math.tanh %342 : vector<8x128xf32>
    %cst_123 = arith.constant 5.000000e-01 : f32
    %344 = vector.broadcast %cst_123 : f32 to vector<8x128xf32>
    %345 = arith.mulf %344, %343 : vector<8x128xf32>
    %cst_124 = arith.constant 5.000000e-01 : f32
    %346 = vector.broadcast %cst_124 : f32 to vector<8x128xf32>
    %347 = arith.addf %345, %346 : vector<8x128xf32>
    %348 = arith.mulf %337, %307 : vector<8x128xf32>
    %349 = arith.mulf %329, %339 : vector<8x128xf32>
    %350 = arith.addf %348, %349 : vector<8x128xf32>
    %351 = math.tanh %350 : vector<8x128xf32>
    %352 = arith.mulf %347, %351 : vector<8x128xf32>
    %353 = arith.truncf %352 : vector<8x128xf32> to vector<8x128xbf16>
    %354 = arith.index_cast %c7_i32 : i32 to index
    %c0_125 = arith.constant 0 : index
    %c0_126 = arith.constant 0 : index
    %355 = vector.load %arg8[%354, %c0_125, %c0_126] : memref<8x8x128xbf16, #tpu.memory_space<vmem>>, vector<1x8x128xbf16>
    %356 = vector.shape_cast %355 : vector<1x8x128xbf16> to vector<8x128xbf16>
    %357 = vector.shape_cast %353 : vector<8x128xbf16> to vector<1x8x128xbf16>
    tpu.vector_store %arg8[%354, %c0_125, %c0_126], %357 {strides = array<i32>} : memref<8x8x128xbf16, #tpu.memory_space<vmem>>, vector<1x8x128xbf16>,
    %c8_i32_127 = arith.constant 8 : i32
    %c0_128 = arith.constant 0 : index
    %c0_129 = arith.constant 0 : index
    %358 = vector.load %arg9[%c0_128, %c0_129] : memref<8x128xf32, #tpu.memory_space<vmem>>, vector<8x128xf32>
    tpu.vector_store %arg9[%c0_128, %c0_129], %352 {strides = array<i32>} : memref<8x128xf32, #tpu.memory_space<vmem>>, vector<8x128xf32>,
    %c0_130 = arith.constant 0 : index
    %c0_131 = arith.constant 0 : index
    %359 = vector.load %arg10[%c0_130, %c0_131] : memref<8x128xf32, #tpu.memory_space<vmem>>, vector<8x128xf32>
    tpu.vector_store %arg10[%c0_130, %c0_131], %350 {strides = array<i32>} : memref<8x128xf32, #tpu.memory_space<vmem>>, vector<8x128xf32>,
    return
  }
  func.func @transform_0(%arg0: i32, %arg1: i32) -> (i32, i32, i32) {
    %c0_i32 = arith.constant 0 : i32
    %c0_i32_0 = arith.constant 0 : i32
    return %arg1, %arg0, %c0_i32 : i32, i32, i32
  }
  func.func @transform_1(%arg0: i32, %arg1: i32) -> (i32, i32) {
    %c0_i32 = arith.constant 0 : i32
    %c0_i32_0 = arith.constant 0 : i32
    %c0_i32_1 = arith.constant 0 : i32
    return %c0_i32, %c0_i32_0 : i32, i32
  }
  func.func @transform_2(%arg0: i32, %arg1: i32) -> (i32, i32) {
    %c0_i32 = arith.constant 0 : i32
    %c0_i32_0 = arith.constant 0 : i32
    %c0_i32_1 = arith.constant 0 : i32
    return %c0_i32, %c0_i32_0 : i32, i32
  }
  func.func @transform_3(%arg0: i32, %arg1: i32) -> (i32, i32) {
    %c0_i32 = arith.constant 0 : i32
    %c0_i32_0 = arith.constant 0 : i32
    %c0_i32_1 = arith.constant 0 : i32
    return %c0_i32, %c0_i32_0 : i32, i32
  }
  func.func @transform_4(%arg0: i32, %arg1: i32) -> (i32, i32) {
    %c0_i32 = arith.constant 0 : i32
    %c0_i32_0 = arith.constant 0 : i32
    return %arg0, %c0_i32 : i32, i32
  }
  func.func @transform_5(%arg0: i32, %arg1: i32) -> (i32, i32) {
    %c0_i32 = arith.constant 0 : i32
    %c0_i32_0 = arith.constant 0 : i32
    return %arg0, %c0_i32 : i32, i32
  }
  func.func @transform_6(%arg0: i32, %arg1: i32) -> (i32, i32, i32) {
    %c0_i32 = arith.constant 0 : i32
    %c0_i32_0 = arith.constant 0 : i32
    return %arg1, %arg0, %c0_i32 : i32, i32, i32
  }
  func.func @transform_7(%arg0: i32, %arg1: i32) -> (i32, i32) {
    %c0_i32 = arith.constant 0 : i32
    %c0_i32_0 = arith.constant 0 : i32
    return %arg0, %c0_i32 : i32, i32
  }
  func.func @transform_8(%arg0: i32, %arg1: i32) -> (i32, i32) {
    %c0_i32 = arith.constant 0 : i32
    %c0_i32_0 = arith.constant 0 : i32
    return %arg0, %c0_i32 : i32, i32
  }
}

</mosaic_0001>

<bundles_post_ra>
// kernel: tpu_custom_call.1
= control target key start
LH: loop header
LB: loop body
LE: loop exit
PB: predicated region body
PF: predicated region fallthrough
CT: control target
= control target key end

     0   :  { %14 = vsyncpa [#allocation4], 0  ;;  %s2749_s0 = inlined_call_operand.hbm [shape: bf16[8,8,128], index: 0, kind: input, shape index: {}]   ;;  %s2750_s1 = inlined_call_operand.hbm [shape: bf16[128,512], index: 1, kind: input, shape index: {}]   ;;  %s2751_s2 = inlined_call_operand.hbm [shape: bf16[128,512], index: 2, kind: input, shape index: {}]   ;;  %s2752_s3 = inlined_call_operand.hbm [shape: f32[1,512], index: 3, kind: input, shape index: {}]   ;;  %s2753_s4 = inlined_call_operand.hbm [shape: f32[8,128], index: 4, kind: input, shape index: {}]   ;;  %s2754_s5 = inlined_call_operand.vmem [shape: f32[8,128], index: 5, kind: input, shape index: {}]   ;;  %s2755_s6 = inlined_call_operand.hbm [shape: bf16[8,8,128], index: 6, kind: output, shape index: {0}]   ;;  %s2756_s7 = inlined_call_operand.hbm [shape: f32[8,128], index: 7, kind: output, shape index: {1}]   ;;  %s2757_s8 = inlined_call_operand.hbm [shape: f32[8,128], index: 8, kind: output, shape index: {2}]  }
   0x1   :  { %15 = vsyncpa [#allocation7], 0 }
   0x2   :  { %16 = vsyncpa [#allocation10], 0 }
   0x3   :  { %17 = vsyncpa [#allocation5], 0 }
   0x4   :  { %18 = vsyncpa [#allocation14], 0  ;;  %s2149_s27 = smov [#allocation6]  }
   0x5   :  { %s36_s28 = sshll.u32 %s2149_s27, 4  ;;  %s37_s28 = int_to_ptr.vmem [resolvable:$true] %s36_s28 }
   0x6   :  { %s1987_s29 = scalar_lea.vmem %s37_s28, 4096  ;;  %p1992_p1 = scmp.lt.s32.totalorder %s37_s28, %s37_s28 }
   0x7   :  { %p1988_p0 = scmp.ne.s32.totalorder %s37_s28, %s1987_s29  ;;  %p1993_p2 = scmp.lt.s32.totalorder %s1987_s29, %s1987_s29 }
   0x9   :  { %p1994_p3 = por %p1993_p2, %p1992_p1 }
   0xb   :  { %p1995_p4 = pnand %p1994_p3, %p1988_p0 }
   0xd   :  { %1998 = shalt.err (!%p1995_p4)
}
   0xe   :  { %s2150_s30 = smov 256   ;;  %s2151_s9 = smov 16  }
   0xf   :  { %42 = dma.hbm_to_vmem [thread:$0]  %s2750_s1, 4096, %s37_s28, [#allocation7], %s2150_s30, %s2150_s30, %s2151_s9  }
  0x10   :  { %s2152_s12 = smov [#allocation9]   ;;  %s2153_s14 = smov [#allocation3]  }
  0x11   :  { %s61_s13 = sshll.u32 %s2152_s12, 4  ;;  %s24_s15 = sshll.u32 %s2153_s14, 4  ;;  %s62_s13 = int_to_ptr.vmem [resolvable:$true] %s61_s13  ;;  %s25_s15 = int_to_ptr.vmem [resolvable:$true] %s24_s15 }
  0x12   :  { %s2007_s16 = scalar_lea.vmem %s62_s13, 64  ;;  %p2012_p6 = scmp.lt.s32.totalorder %s62_s13, %s62_s13 }
  0x13   :  { %p2008_p5 = scmp.ne.s32.totalorder %s62_s13, %s2007_s16  ;;  %p2013_p7 = scmp.lt.s32.totalorder %s2007_s16, %s2007_s16 }
  0x15   :  { %p2014_p8 = por %p2013_p7, %p2012_p6 }
  0x17   :  { %p2015_p9 = pnand %p2014_p8, %p2008_p5 }
  0x19   :  { %2018 = shalt.err (!%p2015_p9)
}
  0x1a   :  { %64 = dma.hbm_to_vmem [thread:$0]  %s2752_s3, 64, %s62_s13, [#allocation10]  }
  0x1b   :  { %s2027_s19 = scalar_lea.vmem %s25_s15, 512  ;;  %p2032_p11 = scmp.lt.s32.totalorder %s25_s15, %s25_s15 }
  0x1c   :  { %p2028_p10 = scmp.ne.s32.totalorder %s25_s15, %s2027_s19  ;;  %p2033_p12 = scmp.lt.s32.totalorder %s2027_s19, %s2027_s19 }
  0x1e   :  { %p2034_p13 = por %p2033_p12, %p2032_p11 }
  0x20   :  { %p2035_p0 = pnand %p2034_p13, %p2028_p10 }
  0x22   :  { %2038 = shalt.err (!%p2035_p0)
}
  0x23   :  { %s2154_s1 = smov 64   ;;  %s2155_s20 = smov 4  }
  0x24   :  { %30 = dma.hbm_to_vmem [thread:$0]  %s2749_s0, 512, %s25_s15, [#allocation4], %s2154_s1, %s2154_s1, %s2155_s20  }
  0x25   :  { %s2156_s23 = smov [#allocation8]   ;;  %s2157_s3 = smov [#allocation11]  }
  0x26   :  { %s48_s24 = sshll.u32 %s2156_s23, 4  ;;  %s71_s25 = sshll.u32 %s2157_s3, 4  ;;  %s49_s24 = int_to_ptr.vmem [resolvable:$true] %s48_s24  ;;  %s72_s25 = int_to_ptr.vmem [resolvable:$true] %s71_s25 }
  0x27   :  { %s2047_s26 = scalar_lea.vmem %s49_s24, 4096  ;;  %p2052_p2 = scmp.lt.s32.totalorder %s49_s24, %s49_s24 }
  0x28   :  { %p2048_p1 = scmp.ne.s32.totalorder %s49_s24, %s2047_s26  ;;  %p2053_p3 = scmp.lt.s32.totalorder %s2047_s26, %s2047_s26 }
  0x2a   :  { %p2054_p4 = por %p2053_p3, %p2052_p2 }
  0x2c   :  { %p2055_p5 = pnand %p2054_p4, %p2048_p1 }
  0x2e   :  { %2058 = shalt.err (!%p2055_p5)
}
  0x2f   :  { %54 = dma.hbm_to_vmem [thread:$0]  %s2751_s2, 4096, %s49_s24, [#allocation7], %s2150_s30, %s2150_s30, %s2151_s9  }
  0x30   :  { %s2067_s0 = scalar_lea.vmem %s72_s25, 128  ;;  %p2072_p7 = scmp.lt.s32.totalorder %s72_s25, %s72_s25 }
  0x31   :  { %p2068_p6 = scmp.ne.s32.totalorder %s72_s25, %s2067_s0  ;;  %p2073_p8 = scmp.lt.s32.totalorder %s2067_s0, %s2067_s0 }
  0x33   :  { %p2074_p9 = por %p2073_p8, %p2072_p7 }
  0x35   :  { %p2075_p10 = pnand %p2074_p9, %p2068_p6 }
  0x37   :  { %2078 = shalt.err (!%p2075_p10)
}
  0x38   :  { %74 = dma.hbm_to_vmem [thread:$0]  %s2753_s4, 128, %s72_s25, [#allocation10]  }
  0x39   :  { %2139 = dma.done.wait [#allocation4], 512  }
  0x3a   :  { %2140 = vsyncadd [#allocation4], 4294966784 }
  0x3b   :  { %2141 = dma.done.wait [#allocation7], 8192  }
  0x3c   :  { %2142 = vsyncadd [#allocation7], 4294959104 }
  0x3d   :  { %2143 = dma.done.wait [#allocation10], 192  }
  0x3e   :  { %2144 = vsyncadd [#allocation10], 4294967104  ;;  %v2758_v0 = vmov 0   ;;  %v1767_v1 = vld [vmem:[#allocation6 + $0xe4] ss:$16 sps:$4 sm:$0xff]   ;;  %v1828_v44 = vld [vmem:[#allocation3 + $0x8] sm:$0xff]  }
  0x3f   :  { %379 = vmatprep.mubr.bf16.mxu0 %v2758_v0  ;;  %452 = vmatprep.mubr.bf16.mxu1 %v2758_v0  ;;  %v1769_v2 = vld [vmem:[#allocation6 + $0xec] ss:$16 sps:$4 sm:$0xff]   ;;  %v1771_v3 = vld [vmem:[#allocation6 + $0xe0] ss:$16 sps:$4 sm:$0xff]   ;;  %v1772_v4 = vld [vmem:[#allocation6 + $0xe8] ss:$16 sps:$4 sm:$0xff]  }
  0x40   :  { %347 = vmatprep.subr.bf16.mxu0 %v1767_v1  ;;  %420 = vmatprep.subr.bf16.mxu1 %v1769_v2  ;;  %v1773_v5 = vld [vmem:[#allocation6 + $0xc4] ss:$16 sps:$4 sm:$0xff]   ;;  %v1775_v6 = vld [vmem:[#allocation6 + $0xcc] ss:$16 sps:$4 sm:$0xff]   ;;  %v1777_v7 = vld [vmem:[#allocation6 + $0xc0] ss:$16 sps:$4 sm:$0xff]  }
  0x41   :  { %348 = vmatpush1.bf16.msra.mxu0 %v1771_v3  ;;  %421 = vmatpush1.bf16.msra.mxu1 %v1772_v4  ;;  %v1778_v8 = vld [vmem:[#allocation6 + $0xc8] ss:$16 sps:$4 sm:$0xff]   ;;  %v1779_v9 = vld [vmem:[#allocation6 + $0xa4] ss:$16 sps:$4 sm:$0xff]   ;;  %v1781_v10 = vld [vmem:[#allocation6 + $0xac] ss:$16 sps:$4 sm:$0xff]  }
  0x42   :  { %349 = vmatprep.subr.bf16.mxu0 %v1773_v5  ;;  %422 = vmatprep.subr.bf16.mxu1 %v1775_v6  ;;  %v1783_v11 = vld [vmem:[#allocation6 + $0xa0] ss:$16 sps:$4 sm:$0xff]   ;;  %v1784_v12 = vld [vmem:[#allocation6 + $0xa8] ss:$16 sps:$4 sm:$0xff]   ;;  %v1785_v13 = vld [vmem:[#allocation6 + $0x84] ss:$16 sps:$4 sm:$0xff]  }
  0x43   :  { %v1787_v14 = vld [vmem:[#allocation6 + $0x8c] ss:$16 sps:$4 sm:$0xff]   ;;  %v1789_v15 = vld [vmem:[#allocation6 + $0x80] ss:$16 sps:$4 sm:$0xff]   ;;  %v1790_v16 = vld [vmem:[#allocation6 + $0x88] ss:$16 sps:$4 sm:$0xff]  }
  0x44   :  { %v1791_v17 = vld [vmem:[#allocation6 + $0x64] ss:$16 sps:$4 sm:$0xff]   ;;  %v1793_v18 = vld [vmem:[#allocation6 + $0x6c] ss:$16 sps:$4 sm:$0xff]   ;;  %v1795_v19 = vld [vmem:[#allocation6 + $0x60] ss:$16 sps:$4 sm:$0xff]  }
  0x45   :  { %350 = vmatpush1.bf16.msra.mxu0 %v1777_v7  ;;  %423 = vmatpush1.bf16.msra.mxu1 %v1778_v8  ;;  %v1796_v20 = vld [vmem:[#allocation6 + $0x68] ss:$16 sps:$4 sm:$0xff]   ;;  %v1797_v21 = vld [vmem:[#allocation6 + $0x44] ss:$16 sps:$4 sm:$0xff]   ;;  %v1799_v22 = vld [vmem:[#allocation6 + $0x4c] ss:$16 sps:$4 sm:$0xff]   ;;  %v143_v8 = vlaneseq }
  0x46   :  { %351 = vmatprep.subr.bf16.mxu0 %v1779_v9  ;;  %424 = vmatprep.subr.bf16.mxu1 %v1781_v10  ;;  %v1801_v23 = vld [vmem:[#allocation6 + $0x40] ss:$16 sps:$4 sm:$0xff]   ;;  %v1802_v24 = vld [vmem:[#allocation6 + $0x48] ss:$16 sps:$4 sm:$0xff]   ;;  %v1803_v25 = vld [vmem:[#allocation6 + $0x24] ss:$16 sps:$4 sm:$0xff]  }
  0x47   :  { %v1805_v26 = vld [vmem:[#allocation6 + $0x2c] ss:$16 sps:$4 sm:$0xff]   ;;  %v1807_v27 = vld [vmem:[#allocation6 + $0x20] ss:$16 sps:$4 sm:$0xff]   ;;  %v1808_v28 = vld [vmem:[#allocation6 + $0x28] ss:$16 sps:$4 sm:$0xff]  }
  0x48   :  { %v1809_v29 = vld [vmem:[#allocation6 + $0x4] ss:$16 sps:$4 sm:$0xff]   ;;  %v1811_v30 = vld [vmem:[#allocation6 + $0xc] ss:$16 sps:$4 sm:$0xff]   ;;  %v1813_v31 = vld [vmem:[#allocation6] ss:$16 sps:$4 sm:$0xff]  }
  0x49   :  { %352 = vmatpush1.bf16.msra.mxu0 %v1783_v11  ;;  %425 = vmatpush1.bf16.msra.mxu1 %v1784_v12  ;;  %v1814_v32 = vld [vmem:[#allocation6 + $0x8] ss:$16 sps:$4 sm:$0xff]   ;;  %v2233_v33 = vld [vmem:[#allocation8 + $0xe4] ss:$16 sps:$4 sm:$0xff]   ;;  %v2235_v34 = vld [vmem:[#allocation8 + $0xec] ss:$16 sps:$4 sm:$0xff]  }
  0x4a   :  { %353 = vmatprep.subr.bf16.mxu0 %v1785_v13  ;;  %426 = vmatprep.subr.bf16.mxu1 %v1787_v14  ;;  %v1815_v35 = vld [vmem:[#allocation3] sm:$0xff]   ;;  %v2239_v37 = vld [vmem:[#allocation8 + $0xe8] ss:$16 sps:$4 sm:$0xff]   ;;  %v2245_v39 = vld [vmem:[#allocation8 + $0xcc] ss:$16 sps:$4 sm:$0xff]   ;;  %v144_v9 = vshrl.u32 %v143_v8, 7 }
  0x4b   :  { %v2237_v36 = vld [vmem:[#allocation8 + $0xe0] ss:$16 sps:$4 sm:$0xff]   ;;  %v2243_v38 = vld [vmem:[#allocation8 + $0xc4] ss:$16 sps:$4 sm:$0xff]   ;;  %v2251_v41 = vld [vmem:[#allocation8 + $0xc8] ss:$16 sps:$4 sm:$0xff]  }
  0x4c   :  { %v2247_v40 = vld [vmem:[#allocation8 + $0xc0] ss:$16 sps:$4 sm:$0xff]   ;;  %v2255_v42 = vld [vmem:[#allocation8 + $0xa4] ss:$16 sps:$4 sm:$0xff]   ;;  %v2257_v43 = vld [vmem:[#allocation8 + $0xac] ss:$16 sps:$4 sm:$0xff]  }
  0x4d   :  { %354 = vmatpush1.bf16.msra.mxu0 %v1789_v15  ;;  %427 = vmatpush1.bf16.msra.mxu1 %v1790_v16  ;;  %v2261_v45 = vld [vmem:[#allocation8 + $0xa0] ss:$16 sps:$4 sm:$0xff]   ;;  %v2263_v46 = vld [vmem:[#allocation8 + $0xa8] ss:$16 sps:$4 sm:$0xff]   ;;  %v2267_v47 = vld [vmem:[#allocation8 + $0x84] ss:$16 sps:$4 sm:$0xff]  }
  0x4e   :  { %355 = vmatprep.subr.bf16.mxu0 %v1791_v17  ;;  %428 = vmatprep.subr.bf16.mxu1 %v1793_v18  ;;  %v2271_v48 = vld [vmem:[#allocation8 + $0x8c] ss:$16 sps:$4 sm:$0xff]   ;;  %v2273_v49 = vld [vmem:[#allocation8 + $0x80] ss:$16 sps:$4 sm:$0xff]   ;;  %v2275_v50 = vld [vmem:[#allocation8 + $0x88] ss:$16 sps:$4 sm:$0xff]  }
  0x4f   :  { %v2279_v51 = vld [vmem:[#allocation8 + $0x64] ss:$16 sps:$4 sm:$0xff]   ;;  %v2283_v52 = vld [vmem:[#allocation8 + $0x6c] ss:$16 sps:$4 sm:$0xff]   ;;  %v2289_v54 = vld [vmem:[#allocation8 + $0x60] ss:$16 sps:$4 sm:$0xff]  }
  0x50   :  { %v1841_v53 = vld [vmem:[#allocation3 + $0x10] sm:$0xff]   ;;  %v2291_v55 = vld [vmem:[#allocation8 + $0x68] ss:$16 sps:$4 sm:$0xff]   ;;  %v2297_v57 = vld [vmem:[#allocation8 + $0x4c] ss:$16 sps:$4 sm:$0xff]   ;;  %v153_v10 = vsub.s32 2, %v144_v9 }
  0x51   :  { %356 = vmatpush1.bf16.msra.mxu0 %v1795_v19  ;;  %429 = vmatpush1.bf16.msra.mxu1 %v1796_v20  ;;  %v2295_v56 = vld [vmem:[#allocation8 + $0x44] ss:$16 sps:$4 sm:$0xff]   ;;  %v2301_v58 = vld [vmem:[#allocation8 + $0x40] ss:$16 sps:$4 sm:$0xff]   ;;  %v2303_v59 = vld [vmem:[#allocation8 + $0x48] ss:$16 sps:$4 sm:$0xff]  }
  0x52   :  { %357 = vmatprep.subr.bf16.mxu0 %v1797_v21  ;;  %430 = vmatprep.subr.bf16.mxu1 %v1799_v22  ;;  %v2307_v60 = vld [vmem:[#allocation8 + $0x24] ss:$16 sps:$4 sm:$0xff]   ;;  %v2309_v61 = vld [vmem:[#allocation8 + $0x2c] ss:$16 sps:$4 sm:$0xff]   ;;  %v2315_v63 = vld [vmem:[#allocation8 + $0x20] ss:$16 sps:$4 sm:$0xff]  }
  0x53   :  { %v1854_v62 = vld [vmem:[#allocation3 + $0x18] sm:$0xff]   ;;  %v2321_v2 = vld [vmem:[#allocation8 + $0x4] ss:$16 sps:$4 sm:$0xff]   ;;  %v2327_v4 = vld [vmem:[#allocation8] ss:$16 sps:$4 sm:$0xff]   ;;  %v145_v11 = vsub.s32 0, %v144_v9 }
  0x54   :  { %v2317_v1 = vld [vmem:[#allocation8 + $0x28] ss:$16 sps:$4 sm:$0xff]   ;;  %v2323_v3 = vld [vmem:[#allocation8 + $0xc] ss:$16 sps:$4 sm:$0xff]   ;;  %v157_v12 = vsub.s32 3, %v144_v9  ;;  %v149_v17 = vsub.s32 1, %v144_v9 }
  0x55   :  { %358 = vmatpush1.bf16.msra.mxu0 %v1801_v23  ;;  %431 = vmatpush1.bf16.msra.mxu1 %v1802_v24  ;;  %v2329_v5 = vld [vmem:[#allocation8 + $0x8] ss:$16 sps:$4 sm:$0xff]   ;;  %v141_v13 = vld [vmem:[#allocation9] sm:$0xf]  ;;  %s2160_s9 = smov [#allocation15]   ;;  %s2161_s12 = smov [#allocation12]  }
  0x56   :  { %359 = vmatprep.subr.bf16.mxu0 %v1803_v25  ;;  %432 = vmatprep.subr.bf16.mxu1 %v1805_v26  ;;  %v97_v6 = vld [vmem:[#allocation11] sm:$0xff]  ;;  %v2377_v16 = vrot.slane %v141_v13, %v153_v10  ;;  %v146_v20 = vrot.slane %v141_v13, %v145_v11  ;;  %v2383_v21 = vrot.slane %v141_v13, %v157_v12  ;;  %s1661_s11 = sshll.u32 %s2160_s9, 4  ;;  %s1638_s13 = sshll.u32 %s2161_s12, 4  ;;  %s1662_s11 = int_to_ptr.vmem [resolvable:$true] %s1661_s11  ;;  %s1639_s13 = int_to_ptr.vmem [resolvable:$true] %s1638_s13 }
  0x57   :  { %v566_v7 = vpack.c.bf16 %v97_v6, %v97_v6  ;;  %v150_v24 = vrot.slane %v141_v13, %v149_v17 }
  0x59   :  { %360 = vmatpush1.bf16.msra.mxu0 %v1807_v27  ;;  %433 = vmatpush1.bf16.msra.mxu1 %v1808_v28 }
  0x5a   :  { %361 = vmatprep.subr.bf16.mxu0 %v1809_v29  ;;  %434 = vmatprep.subr.bf16.mxu1 %v1811_v30 }
  0x5d   :  { %362 = vmatpush1.bf16.msra.mxu0 %v1813_v31  ;;  %435 = vmatpush1.bf16.msra.mxu1 %v1814_v32 }
  0x5e   :  { %727 = vmatprep.subr.bf16.mxu0 %v2233_v33  ;;  %768 = vmatprep.subr.bf16.mxu1 %v2235_v34 }
  0x60   :  { %380 = vmatmul.mubr.bf16.vlgmr.msra.gmra.mxu0 %v1815_v35  ;;  %453 = vmatmul.mubr.bf16.vlgmr.msra.gmra.mxu1 %v1815_v35 }
  0x61   :  { %728 = vmatpush1.bf16.msra.mxu0 %v2237_v36  ;;  %769 = vmatpush1.bf16.msra.mxu1 %v2239_v37 }
  0x62   :  { %729 = vmatprep.subr.bf16.mxu0 %v2243_v38  ;;  %770 = vmatprep.subr.bf16.mxu1 %v2245_v39 }
  0x63   :  { %389 = vmatprep.mubr.bf16.mxu0 %v2758_v0  ;;  %462 = vmatprep.mubr.bf16.mxu1 %v2758_v0 }
  0x65   :  { %730 = vmatpush1.bf16.msra.mxu0 %v2247_v40  ;;  %771 = vmatpush1.bf16.msra.mxu1 %v2251_v41 }
  0x66   :  { %731 = vmatprep.subr.bf16.mxu0 %v2255_v42  ;;  %772 = vmatprep.subr.bf16.mxu1 %v2257_v43 }
  0x68   :  { %390 = vmatmul.mubr.bf16.gmra.mxu0 %v1828_v44  ;;  %463 = vmatmul.mubr.bf16.gmra.mxu1 %v1828_v44 }
  0x69   :  { %732 = vmatpush1.bf16.msra.mxu0 %v2261_v45  ;;  %773 = vmatpush1.bf16.msra.mxu1 %v2263_v46 }
  0x6a   :  { %733 = vmatprep.subr.bf16.mxu0 %v2267_v47  ;;  %774 = vmatprep.subr.bf16.mxu1 %v2271_v48 }
  0x6b   :  { %399 = vmatprep.mubr.bf16.mxu0 %v2758_v0  ;;  %472 = vmatprep.mubr.bf16.mxu1 %v2758_v0 }
  0x6d   :  { %734 = vmatpush1.bf16.msra.mxu0 %v2273_v49  ;;  %775 = vmatpush1.bf16.msra.mxu1 %v2275_v50 }
  0x6e   :  { %735 = vmatprep.subr.bf16.mxu0 %v2279_v51  ;;  %776 = vmatprep.subr.bf16.mxu1 %v2283_v52 }
  0x70   :  { %400 = vmatmul.mubr.bf16.gmra.mxu0 %v1841_v53  ;;  %473 = vmatmul.mubr.bf16.gmra.mxu1 %v1841_v53 }
  0x71   :  { %736 = vmatpush1.bf16.msra.mxu0 %v2289_v54  ;;  %777 = vmatpush1.bf16.msra.mxu1 %v2291_v55 }
  0x72   :  { %737 = vmatprep.subr.bf16.mxu0 %v2295_v56  ;;  %778 = vmatprep.subr.bf16.mxu1 %v2297_v57 }
  0x73   :  { %409 = vmatprep.mubr.bf16.mxu0 %v2758_v0  ;;  %482 = vmatprep.mubr.bf16.mxu1 %v2758_v0 }
  0x75   :  { %738 = vmatpush1.bf16.msra.mxu0 %v2301_v58  ;;  %779 = vmatpush1.bf16.msra.mxu1 %v2303_v59 }
  0x76   :  { %739 = vmatprep.subr.bf16.mxu0 %v2307_v60  ;;  %780 = vmatprep.subr.bf16.mxu1 %v2309_v61 }
  0x78   :  { %410 = vmatmul.mubr.bf16.gmra.mxu0 %v1854_v62  ;;  %483 = vmatmul.mubr.bf16.gmra.mxu1 %v1854_v62 }
  0x79   :  { %740 = vmatpush1.bf16.msra.mxu0 %v2315_v63  ;;  %781 = vmatpush1.bf16.msra.mxu1 %v2317_v1 }
  0x7a   :  { %741 = vmatprep.subr.bf16.mxu0 %v2321_v2  ;;  %782 = vmatprep.subr.bf16.mxu1 %v2323_v3 }
  0x7b   :  { %759 = vmatprep.mubr.bf16.mxu0 %v2758_v0  ;;  %800 = vmatprep.mubr.bf16.mxu1 %v2758_v0 }
  0x7d   :  { %742 = vmatpush1.bf16.msra.mxu0 %v2327_v4  ;;  %783 = vmatpush1.bf16.msra.mxu1 %v2329_v5 }
  0x7e   :  { %840 = vmatprep.subr.bf16.mxu0 %v2233_v33  ;;  %881 = vmatprep.subr.bf16.mxu1 %v2235_v34 }
  0x80   :  { %760 = vmatmul.mubr.bf16.vlgmr.msra.gmra.mxu0 %v566_v7  ;;  %801 = vmatmul.mubr.bf16.vlgmr.msra.gmra.mxu1 %v566_v7 }
  0x81   :  { %841 = vmatpush1.bf16.msra.mxu0 %v2237_v36  ;;  %882 = vmatpush1.bf16.msra.mxu1 %v2239_v37 }
  0x82   :  { %842 = vmatprep.subr.bf16.mxu0 %v2243_v38  ;;  %883 = vmatprep.subr.bf16.mxu1 %v2245_v39 }
  0x83   :  { %872 = vmatprep.mubr.bf16.mxu0 %v2758_v0  ;;  %913 = vmatprep.mubr.bf16.mxu1 %v2758_v0 }
  0x85   :  { %843 = vmatpush1.bf16.msra.mxu0 %v2247_v40  ;;  %884 = vmatpush1.bf16.msra.mxu1 %v2251_v41 }
  0x86   :  { %844 = vmatprep.subr.bf16.mxu0 %v2255_v42  ;;  %885 = vmatprep.subr.bf16.mxu1 %v2257_v43 }
  0x89   :  { %845 = vmatpush1.bf16.msra.mxu0 %v2261_v45  ;;  %886 = vmatpush1.bf16.msra.mxu1 %v2263_v46 }
  0x8a   :  { %846 = vmatprep.subr.bf16.mxu0 %v2267_v47  ;;  %887 = vmatprep.subr.bf16.mxu1 %v2271_v48 }
  0x8d   :  { %847 = vmatpush1.bf16.msra.mxu0 %v2273_v49  ;;  %888 = vmatpush1.bf16.msra.mxu1 %v2275_v50 }
  0x8e   :  { %848 = vmatprep.subr.bf16.mxu0 %v2279_v51  ;;  %889 = vmatprep.subr.bf16.mxu1 %v2283_v52 }
  0x91   :  { %849 = vmatpush1.bf16.msra.mxu0 %v2289_v54  ;;  %890 = vmatpush1.bf16.msra.mxu1 %v2291_v55 }
  0x92   :  { %850 = vmatprep.subr.bf16.mxu0 %v2295_v56  ;;  %891 = vmatprep.subr.bf16.mxu1 %v2297_v57 }
  0x95   :  { %851 = vmatpush1.bf16.msra.mxu0 %v2301_v58  ;;  %892 = vmatpush1.bf16.msra.mxu1 %v2303_v59 }
  0x96   :  { %852 = vmatprep.subr.bf16.mxu0 %v2307_v60  ;;  %893 = vmatprep.subr.bf16.mxu1 %v2309_v61 }
  0x99   :  { %853 = vmatpush1.bf16.msra.mxu0 %v2315_v63  ;;  %894 = vmatpush1.bf16.msra.mxu1 %v2317_v1 }
  0x9a   :  { %854 = vmatprep.subr.bf16.mxu0 %v2321_v2  ;;  %895 = vmatprep.subr.bf16.mxu1 %v2323_v3 }
  0x9d   :  { %855 = vmatpush1.bf16.msra.mxu0 %v2327_v4  ;;  %896 = vmatpush1.bf16.msra.mxu1 %v2329_v5 }
  0x9e   :  { %954 = vmatprep.subr.bf16.mxu0 %v2233_v33  ;;  %995 = vmatprep.subr.bf16.mxu1 %v2235_v34 }
 0x120   :  { %v2373_v14 = vpop.f32.mrf.mxu0  ;;  %v2375_v15 = vpop.f32.mrf.mxu1 }
 0x122   :  { %v2379_v18 = vpop.f32.mrf.mxu0  ;;  %v2381_v19 = vpop.f32.mrf.mxu1 }
 0x124   :  { %v385_v22 = vpop.f32.mrf.mxu0  ;;  %v458_v23 = vpop.f32.mrf.mxu1 }
 0x125   :  { %v2385_v25 = vadd.f32 %v385_v22, %v146_v20  ;;  %v2388_v26 = vadd.f32 %v458_v23, %v2377_v16 }
 0x126   :  { %v387_v27 = vpop.f32.mrf.mxu0  ;;  %v460_v28 = vpop.f32.mrf.mxu1 }
 0x127   :  { %v2390_v29 = vadd.f32 %v387_v27, %v150_v24  ;;  %v2393_v30 = vadd.f32 %v460_v28, %v2383_v21 }
 0x128   :  { %v391_v31 = vpop.f32.mrf.mxu0  ;;  %v464_v32 = vpop.f32.mrf.mxu1 }
 0x129   :  { %v2395_v35 = vadd.f32 %v391_v31, %v146_v20  ;;  %v2398_v44 = vadd.f32 %v464_v32, %v2377_v16 }
 0x12a   :  { %v393_v53 = vpop.f32.mrf.mxu0  ;;  %v466_v62 = vpop.f32.mrf.mxu1 }
 0x12b   :  { %v2400_v6 = vadd.f32 %v393_v53, %v150_v24  ;;  %v2403_v7 = vadd.f32 %v466_v62, %v2383_v21 }
 0x12c   :  { %v395_v8 = vpop.f32.mrf.mxu0  ;;  %v468_v9 = vpop.f32.mrf.mxu1 }
 0x12d   :  { %v2405_v10 = vadd.f32 %v395_v8, %v146_v20  ;;  %v2408_v11 = vadd.f32 %v468_v9, %v2377_v16 }
 0x12e   :  { %v397_v12 = vpop.f32.mrf.mxu0  ;;  %v470_v13 = vpop.f32.mrf.mxu1 }
 0x12f   :  { %2760 = vst [vmem:[#allocation21_spill] sm:$0xff] %v2405_v10  ;;  %2761 = vst [vmem:[#allocation22_spill] sm:$0xff] %v2408_v11  ;;  %v2410_v17 = vadd.f32 %v397_v12, %v150_v24  ;;  %v2413_v22 = vadd.f32 %v470_v13, %v2383_v21  ;;  %v455_v10 = vadd.f32 %v2375_v15, %v2377_v16  ;;  %v99_v15 = vld [vmem:[%s2754_s5] sm:$0xff]  ;;  %s2159_s5 = smov [#allocation13]  }
 0x130   :  { %v401_v23 = vpop.f32.mrf.mxu0  ;;  %v474_v27 = vpop.f32.mrf.mxu1  ;;  %s1651_s30 = sshll.u32 %s2159_s5, 4  ;;  %s1652_s30 = int_to_ptr.vmem [resolvable:$true] %s1651_s30 }
 0x131   :  { %2762 = vst [vmem:[#allocation23_spill] sm:$0xff] %v2410_v17  ;;  %2763 = vst [vmem:[#allocation24_spill] sm:$0xff] %v2413_v22  ;;  %v2415_v28 = vadd.f32 %v401_v23, %v146_v20  ;;  %v2418_v31 = vadd.f32 %v474_v27, %v2377_v16  ;;  %s2079_s14 = scalar_lea.vmem %s1652_s30, 128  ;;  %p2084_p12 = scmp.lt.s32.totalorder %s1652_s30, %s1652_s30 }
 0x132   :  { %v403_v32 = vpop.f32.mrf.mxu0  ;;  %v476_v53 = vpop.f32.mrf.mxu1  ;;  %p2080_p11 = scmp.ne.s32.totalorder %s1652_s30, %s2079_s14  ;;  %p2085_p13 = scmp.lt.s32.totalorder %s2079_s14, %s2079_s14 }
 0x133   :  { %2764 = vst [vmem:[#allocation25_spill] sm:$0xff] %v2415_v28  ;;  %2765 = vst [vmem:[#allocation26_spill] sm:$0xff] %v2418_v31  ;;  %v2420_v62 = vadd.f32 %v403_v32, %v150_v24  ;;  %v2423_v8 = vadd.f32 %v476_v53, %v2383_v21 }
 0x134   :  { %v405_v9 = vpop.f32.mrf.mxu0  ;;  %v478_v12 = vpop.f32.mrf.mxu1  ;;  %p2086_p0 = por %p2085_p13, %p2084_p12 }
 0x135   :  { %2766 = vst [vmem:[#allocation27_spill] sm:$0xff] %v2420_v62  ;;  %2767 = vst [vmem:[#allocation28_spill] sm:$0xff] %v2423_v8  ;;  %v2425_v0 = vadd.f32 %v405_v9, %v146_v20  ;;  %v2428_v13 = vadd.f32 %v478_v12, %v2377_v16 }
 0x136   :  { %v407_v22 = vpop.f32.mrf.mxu0  ;;  %v480_v23 = vpop.f32.mrf.mxu1  ;;  %p2087_p1 = pnand %p2086_p0, %p2080_p11 }
 0x137   :  { %2768 = vst [vmem:[#allocation29_spill] sm:$0xff] %v2425_v0  ;;  %2769 = vst [vmem:[#allocation30_spill] sm:$0xff] %v2428_v13  ;;  %v2430_v28 = vadd.f32 %v407_v22, %v150_v24  ;;  %v2433_v27 = vadd.f32 %v480_v23, %v2383_v21 }
 0x138   :  { %v411_v31 = vpop.f32.mrf.mxu0  ;;  %v484_v32 = vpop.f32.mrf.mxu1 }
 0x139   :  { %2770 = vst [vmem:[#allocation31_spill] sm:$0xff] %v2430_v28  ;;  %2771 = vst [vmem:[#allocation32_spill] sm:$0xff] %v2433_v27  ;;  %v2435_v62 = vadd.f32 %v411_v31, %v146_v20  ;;  %v2438_v53 = vadd.f32 %v484_v32, %v2377_v16 }
 0x13a   :  { %v413_v8 = vpop.f32.mrf.mxu0  ;;  %v486_v9 = vpop.f32.mrf.mxu1 }
 0x13b   :  { %2772 = vst [vmem:[#allocation33_spill] sm:$0xff] %v2435_v62  ;;  %2773 = vst [vmem:[#allocation34_spill] sm:$0xff] %v2438_v53  ;;  %v2440_v0 = vadd.f32 %v413_v8, %v150_v24  ;;  %v2443_v12 = vadd.f32 %v486_v9, %v2383_v21  ;;  %v382_v62 = vadd.f32 %v2373_v14, %v146_v20 }
 0x13c   :  { %v415_v13 = vpop.f32.mrf.mxu0  ;;  %v488_v22 = vpop.f32.mrf.mxu1  ;;  %v384_v9 = vadd.f32 %v2379_v18, %v150_v24 }
 0x13d   :  { %2774 = vst [vmem:[#allocation35_spill] sm:$0xff] %v2440_v0  ;;  %2775 = vst [vmem:[#allocation36_spill] sm:$0xff] %v2443_v12  ;;  %v2445_v28 = vadd.f32 %v415_v13, %v146_v20  ;;  %v2448_v23 = vadd.f32 %v488_v22, %v2377_v16 }
 0x13e   :  { %v417_v27 = vpop.f32.mrf.mxu0  ;;  %v490_v31 = vpop.f32.mrf.mxu1 }
 0x13f   :  { %2776 = vst [vmem:[#allocation37_spill] sm:$0xff] %v2445_v28  ;;  %2777 = vst [vmem:[#allocation38_spill] sm:$0xff] %v2448_v23  ;;  %v2451_v32 = vadd.f32 %v417_v27, %v150_v24  ;;  %v2454_v53 = vadd.f32 %v490_v31, %v2383_v21 }
 0x140   :  { %v761_v8 = vpop.f32.mrf.mxu0  ;;  %v802_v0 = vpop.f32.mrf.mxu1 }
 0x141   :  { %2778 = vst [vmem:[#allocation39_spill] sm:$0xff] %v2454_v53  ;;  %v809_v12 = vadd.f32 %v761_v8, %v382_v62  ;;  %v811_v31 = vadd.f32 %v802_v0, %v455_v10  ;;  %v457_v53 = vadd.f32 %v2381_v19, %v2383_v21 }
 0x142   :  { %v763_v11 = vpop.f32.mrf.mxu0  ;;  %v804_v13 = vpop.f32.mrf.mxu1 }
 0x143   :  { %v813_v28 = vmul.f32 0.5, %v809_v12  ;;  %v810_v17 = vadd.f32 %v763_v11, %v384_v9  ;;  %v812_v18 = vadd.f32 %v804_v13, %v457_v53 }
 0x144   :  { %v765_v22 = vpop.f32.mrf.mxu0  ;;  %v806_v23 = vpop.f32.mrf.mxu1 }
 0x145   :  { %1867 = vtanh.f32 %v813_v28  ;;  %v817_v14 = vmul.f32 0.5, %v810_v17  ;;  %v822_v24 = vmul.f32 0.5, %v812_v18 }
 0x146   :  { %v766_v20 = vpop.f32.mrf.mxu0  ;;  %v807_v27 = vpop.f32.mrf.mxu1 }
 0x147   :  { %1869 = vtanh.f32 %v817_v14  ;;  %v2779_v14 = vmov 0  }
 0x148   :  { %1871 = vtanh.f32 %v811_v31 }
 0x149   :  { %1873 = vtanh.f32 %v822_v24 }
 0x152   :  { %v1868_v62 = vpop.eup %1867 }
 0x153   :  { %v815_v12 = vmul.f32 0.5, %v1868_v62 }
 0x154   :  { %v1870_v11 = vpop.eup %1869 }
 0x155   :  { %v816_v8 = vadd.f32 0.5, %v815_v12  ;;  %v819_v23 = vmul.f32 0.5, %v1870_v11  ;;  %v1872_v17 = vpop.eup %1871 }
 0x156   :  { %v1874_v19 = vpop.eup %1873 }
 0x157   :  { %v820_v16 = vadd.f32 0.5, %v819_v23  ;;  %v827_v10 = vmul.f32 %v1872_v17, %v816_v8  ;;  %v824_v21 = vmul.f32 0.5, %v1874_v19 }
 0x159   :  { %v826_v0 = vmul.f32 %v820_v16, %v99_v15  ;;  %v825_v53 = vadd.f32 0.5, %v824_v21 }
 0x15b   :  { %v2464_v28 = vadd.f32 %v827_v10, %v826_v0 }
 0x15d   :  { %1875 = vtanh.f32 %v2464_v28 }
 0x16a   :  { %v1876_v9 = vpop.eup %1875 }
 0x16b   :  { %v830_v13 = vmul.f32 %v1876_v9, %v825_v53 }
 0x16d   :  { %v831_v22 = vpack.c.bf16 %v830_v13, %v830_v13 }
 0x16f   :  { %832 = vst [vmem:[#allocation12] sm:$0xf] %v831_v22  ;;  %873 = vmatmul.mubr.bf16.vlgmr.msra.gmra.mxu0 %v831_v22  ;;  %914 = vmatmul.mubr.bf16.vlgmr.msra.gmra.mxu1 %v831_v22 }
 0x170   :  { %955 = vmatpush1.bf16.msra.mxu0 %v2237_v36  ;;  %996 = vmatpush1.bf16.msra.mxu1 %v2239_v37 }
 0x171   :  { %956 = vmatprep.subr.bf16.mxu0 %v2243_v38  ;;  %997 = vmatprep.subr.bf16.mxu1 %v2245_v39 }
 0x172   :  { %986 = vmatprep.mubr.bf16.mxu0 %v2779_v14  ;;  %1027 = vmatprep.mubr.bf16.mxu1 %v2779_v14 }
 0x174   :  { %957 = vmatpush1.bf16.msra.mxu0 %v2247_v40  ;;  %998 = vmatpush1.bf16.msra.mxu1 %v2251_v41 }
 0x175   :  { %958 = vmatprep.subr.bf16.mxu0 %v2255_v42  ;;  %999 = vmatprep.subr.bf16.mxu1 %v2257_v43 }
 0x178   :  { %959 = vmatpush1.bf16.msra.mxu0 %v2261_v45  ;;  %1000 = vmatpush1.bf16.msra.mxu1 %v2263_v46 }
 0x179   :  { %960 = vmatprep.subr.bf16.mxu0 %v2267_v47  ;;  %1001 = vmatprep.subr.bf16.mxu1 %v2271_v48 }
 0x17c   :  { %961 = vmatpush1.bf16.msra.mxu0 %v2273_v49  ;;  %1002 = vmatpush1.bf16.msra.mxu1 %v2275_v50 }
 0x17d   :  { %962 = vmatprep.subr.bf16.mxu0 %v2279_v51  ;;  %1003 = vmatprep.subr.bf16.mxu1 %v2283_v52 }
 0x180   :  { %963 = vmatpush1.bf16.msra.mxu0 %v2289_v54  ;;  %1004 = vmatpush1.bf16.msra.mxu1 %v2291_v55 }
 0x181   :  { %964 = vmatprep.subr.bf16.mxu0 %v2295_v56  ;;  %1005 = vmatprep.subr.bf16.mxu1 %v2297_v57 }
 0x184   :  { %965 = vmatpush1.bf16.msra.mxu0 %v2301_v58  ;;  %1006 = vmatpush1.bf16.msra.mxu1 %v2303_v59 }
 0x185   :  { %966 = vmatprep.subr.bf16.mxu0 %v2307_v60  ;;  %1007 = vmatprep.subr.bf16.mxu1 %v2309_v61 }
 0x188   :  { %967 = vmatpush1.bf16.msra.mxu0 %v2315_v63  ;;  %1008 = vmatpush1.bf16.msra.mxu1 %v2317_v1 }
 0x189   :  { %968 = vmatprep.subr.bf16.mxu0 %v2321_v2  ;;  %1009 = vmatprep.subr.bf16.mxu1 %v2323_v3 }
 0x18c   :  { %969 = vmatpush1.bf16.msra.mxu0 %v2327_v4  ;;  %1010 = vmatpush1.bf16.msra.mxu1 %v2329_v5 }
 0x18d   :  { %1068 = vmatprep.subr.bf16.mxu0 %v2233_v33  ;;  %1109 = vmatprep.subr.bf16.mxu1 %v2235_v34 }
 0x22f   :  { %v874_v20 = vpop.f32.mrf.mxu0  ;;  %v915_v27 = vpop.f32.mrf.mxu1 }
 0x230   :  { %v922_v31 = vadd.f32 %v874_v20, %v2385_v25  ;;  %v924_v23 = vadd.f32 %v915_v27, %v2388_v26 }
 0x231   :  { %v876_v18 = vpop.f32.mrf.mxu0  ;;  %v917_v24 = vpop.f32.mrf.mxu1 }
 0x232   :  { %v926_v62 = vmul.f32 0.5, %v922_v31  ;;  %v923_v12 = vadd.f32 %v876_v18, %v2390_v29  ;;  %v925_v0 = vadd.f32 %v917_v24, %v2393_v30 }
 0x233   :  { %v878_v11 = vpop.f32.mrf.mxu0  ;;  %v919_v8 = vpop.f32.mrf.mxu1 }
 0x234   :  { %1877 = vtanh.f32 %v926_v62  ;;  %v930_v15 = vmul.f32 0.5, %v923_v12  ;;  %v935_v10 = vmul.f32 0.5, %v925_v0 }
 0x235   :  { %v879_v16 = vpop.f32.mrf.mxu0  ;;  %v920_v17 = vpop.f32.mrf.mxu1 }
 0x236   :  { %1879 = vtanh.f32 %v930_v15 }
 0x237   :  { %1881 = vtanh.f32 %v924_v23 }
 0x238   :  { %1883 = vtanh.f32 %v935_v10 }
 0x241   :  { %v1878_v19 = vpop.eup %1877 }
 0x242   :  { %v928_v25 = vmul.f32 0.5, %v1878_v19 }
 0x243   :  { %v1880_v21 = vpop.eup %1879 }
 0x244   :  { %v929_v53 = vadd.f32 0.5, %v928_v25  ;;  %v932_v9 = vmul.f32 0.5, %v1880_v21  ;;  %v1882_v29 = vpop.eup %1881 }
 0x245   :  { %v1884_v27 = vpop.eup %1883 }
 0x246   :  { %v933_v13 = vadd.f32 0.5, %v932_v9  ;;  %v940_v22 = vmul.f32 %v1882_v29, %v929_v53  ;;  %v937_v31 = vmul.f32 0.5, %v1884_v27 }
 0x248   :  { %v939_v20 = vmul.f32 %v933_v13, %v2464_v28  ;;  %v938_v18 = vadd.f32 0.5, %v937_v31 }
 0x24a   :  { %v2506_v26 = vadd.f32 %v940_v22, %v939_v20 }
 0x24c   :  { %1885 = vtanh.f32 %v2506_v26 }
 0x259   :  { %v1886_v30 = vpop.eup %1885 }
 0x25a   :  { %v943_v24 = vmul.f32 %v1886_v30, %v938_v18 }
 0x25c   :  { %v944_v62 = vpack.c.bf16 %v943_v24, %v943_v24 }
 0x25e   :  { %946 = vst [vmem:[#allocation12 + $0x4] sm:$0xf] %v944_v62  ;;  %987 = vmatmul.mubr.bf16.vlgmr.msra.gmra.mxu0 %v944_v62  ;;  %1028 = vmatmul.mubr.bf16.vlgmr.msra.gmra.mxu1 %v944_v62 }
 0x25f   :  { %1069 = vmatpush1.bf16.msra.mxu0 %v2237_v36  ;;  %1110 = vmatpush1.bf16.msra.mxu1 %v2239_v37 }
 0x260   :  { %1070 = vmatprep.subr.bf16.mxu0 %v2243_v38  ;;  %1111 = vmatprep.subr.bf16.mxu1 %v2245_v39 }
 0x261   :  { %1100 = vmatprep.mubr.bf16.mxu0 %v2779_v14  ;;  %1141 = vmatprep.mubr.bf16.mxu1 %v2779_v14 }
 0x263   :  { %1071 = vmatpush1.bf16.msra.mxu0 %v2247_v40  ;;  %1112 = vmatpush1.bf16.msra.mxu1 %v2251_v41 }
 0x264   :  { %1072 = vmatprep.subr.bf16.mxu0 %v2255_v42  ;;  %1113 = vmatprep.subr.bf16.mxu1 %v2257_v43 }
 0x267   :  { %1073 = vmatpush1.bf16.msra.mxu0 %v2261_v45  ;;  %1114 = vmatpush1.bf16.msra.mxu1 %v2263_v46 }
 0x268   :  { %1074 = vmatprep.subr.bf16.mxu0 %v2267_v47  ;;  %1115 = vmatprep.subr.bf16.mxu1 %v2271_v48 }
 0x26b   :  { %1075 = vmatpush1.bf16.msra.mxu0 %v2273_v49  ;;  %1116 = vmatpush1.bf16.msra.mxu1 %v2275_v50 }
 0x26c   :  { %1076 = vmatprep.subr.bf16.mxu0 %v2279_v51  ;;  %1117 = vmatprep.subr.bf16.mxu1 %v2283_v52 }
 0x26f   :  { %1077 = vmatpush1.bf16.msra.mxu0 %v2289_v54  ;;  %1118 = vmatpush1.bf16.msra.mxu1 %v2291_v55 }
 0x270   :  { %1078 = vmatprep.subr.bf16.mxu0 %v2295_v56  ;;  %1119 = vmatprep.subr.bf16.mxu1 %v2297_v57 }
 0x273   :  { %1079 = vmatpush1.bf16.msra.mxu0 %v2301_v58  ;;  %1120 = vmatpush1.bf16.msra.mxu1 %v2303_v59 }
 0x274   :  { %1080 = vmatprep.subr.bf16.mxu0 %v2307_v60  ;;  %1121 = vmatprep.subr.bf16.mxu1 %v2309_v61 }
 0x277   :  { %1081 = vmatpush1.bf16.msra.mxu0 %v2315_v63  ;;  %1122 = vmatpush1.bf16.msra.mxu1 %v2317_v1 }
 0x278   :  { %1082 = vmatprep.subr.bf16.mxu0 %v2321_v2  ;;  %1123 = vmatprep.subr.bf16.mxu1 %v2323_v3 }
 0x27b   :  { %1083 = vmatpush1.bf16.msra.mxu0 %v2327_v4  ;;  %1124 = vmatpush1.bf16.msra.mxu1 %v2329_v5 }
 0x27c   :  { %1182 = vmatprep.subr.bf16.mxu0 %v2233_v33  ;;  %1223 = vmatprep.subr.bf16.mxu1 %v2235_v34 }
 0x31e   :  { %v988_v28 = vpop.f32.mrf.mxu0  ;;  %v1029_v12 = vpop.f32.mrf.mxu1 }
 0x31f   :  { %v1036_v11 = vadd.f32 %v988_v28, %v2395_v35  ;;  %v1038_v10 = vadd.f32 %v1029_v12, %v2398_v44 }
 0x320   :  { %v990_v8 = vpop.f32.mrf.mxu0  ;;  %v1031_v23 = vpop.f32.mrf.mxu1 }
 0x321   :  { %v1040_v15 = vmul.f32 0.5, %v1036_v11  ;;  %v1037_v16 = vadd.f32 %v990_v8, %v2400_v6  ;;  %v1039_v53 = vadd.f32 %v1031_v23, %v2403_v7  ;;  %v2780_v8 = vld [vmem:[#allocation21_spill] sm:$0xff] }
 0x322   :  { %v992_v17 = vpop.f32.mrf.mxu0  ;;  %v1033_v0 = vpop.f32.mrf.mxu1 }
 0x323   :  { %1887 = vtanh.f32 %v1040_v15  ;;  %v1044_v19 = vmul.f32 0.5, %v1037_v16  ;;  %v1049_v9 = vmul.f32 0.5, %v1039_v53  ;;  %v2781_v0 = vld [vmem:[#allocation23_spill] sm:$0xff] }
 0x324   :  { %v993_v25 = vpop.f32.mrf.mxu0  ;;  %v1034_v21 = vpop.f32.mrf.mxu1 }
 0x325   :  { %1889 = vtanh.f32 %v1044_v19  ;;  %v2782_v21 = vld [vmem:[#allocation22_spill] sm:$0xff] }
 0x326   :  { %1891 = vtanh.f32 %v1038_v10 }
 0x327   :  { %1893 = vtanh.f32 %v1049_v9 }
 0x330   :  { %v1888_v29 = vpop.eup %1887 }
 0x331   :  { %v1042_v35 = vmul.f32 0.5, %v1888_v29 }
 0x332   :  { %v1890_v13 = vpop.eup %1889 }
 0x333   :  { %v1043_v22 = vadd.f32 0.5, %v1042_v35  ;;  %v1046_v20 = vmul.f32 0.5, %v1890_v13  ;;  %v1892_v6 = vpop.eup %1891 }
 0x334   :  { %v1894_v30 = vpop.eup %1893 }
 0x335   :  { %v1047_v27 = vadd.f32 0.5, %v1046_v20  ;;  %v1054_v31 = vmul.f32 %v1892_v6, %v1043_v22  ;;  %v1051_v24 = vmul.f32 0.5, %v1894_v30 }
 0x337   :  { %v1053_v18 = vmul.f32 %v1047_v27, %v2506_v26  ;;  %v1052_v62 = vadd.f32 0.5, %v1051_v24 }
 0x339   :  { %v2548_v44 = vadd.f32 %v1054_v31, %v1053_v18 }
 0x33b   :  { %1895 = vtanh.f32 %v2548_v44 }
 0x348   :  { %v1896_v7 = vpop.eup %1895 }
 0x349   :  { %v1057_v28 = vmul.f32 %v1896_v7, %v1052_v62 }
 0x34b   :  { %v1058_v12 = vpack.c.bf16 %v1057_v28, %v1057_v28 }
 0x34d   :  { %1060 = vst [vmem:[#allocation12 + $0x8] sm:$0xf] %v1058_v12  ;;  %1101 = vmatmul.mubr.bf16.vlgmr.msra.gmra.mxu0 %v1058_v12  ;;  %1142 = vmatmul.mubr.bf16.vlgmr.msra.gmra.mxu1 %v1058_v12 }
 0x34e   :  { %1183 = vmatpush1.bf16.msra.mxu0 %v2237_v36  ;;  %1224 = vmatpush1.bf16.msra.mxu1 %v2239_v37 }
 0x34f   :  { %1184 = vmatprep.subr.bf16.mxu0 %v2243_v38  ;;  %1225 = vmatprep.subr.bf16.mxu1 %v2245_v39 }
 0x350   :  { %1214 = vmatprep.mubr.bf16.mxu0 %v2779_v14  ;;  %1255 = vmatprep.mubr.bf16.mxu1 %v2779_v14 }
 0x352   :  { %1185 = vmatpush1.bf16.msra.mxu0 %v2247_v40  ;;  %1226 = vmatpush1.bf16.msra.mxu1 %v2251_v41 }
 0x353   :  { %1186 = vmatprep.subr.bf16.mxu0 %v2255_v42  ;;  %1227 = vmatprep.subr.bf16.mxu1 %v2257_v43 }
 0x356   :  { %1187 = vmatpush1.bf16.msra.mxu0 %v2261_v45  ;;  %1228 = vmatpush1.bf16.msra.mxu1 %v2263_v46 }
 0x357   :  { %1188 = vmatprep.subr.bf16.mxu0 %v2267_v47  ;;  %1229 = vmatprep.subr.bf16.mxu1 %v2271_v48 }
 0x35a   :  { %1189 = vmatpush1.bf16.msra.mxu0 %v2273_v49  ;;  %1230 = vmatpush1.bf16.msra.mxu1 %v2275_v50 }
 0x35b   :  { %1190 = vmatprep.subr.bf16.mxu0 %v2279_v51  ;;  %1231 = vmatprep.subr.bf16.mxu1 %v2283_v52 }
 0x35e   :  { %1191 = vmatpush1.bf16.msra.mxu0 %v2289_v54  ;;  %1232 = vmatpush1.bf16.msra.mxu1 %v2291_v55 }
 0x35f   :  { %1192 = vmatprep.subr.bf16.mxu0 %v2295_v56  ;;  %1233 = vmatprep.subr.bf16.mxu1 %v2297_v57 }
 0x362   :  { %1193 = vmatpush1.bf16.msra.mxu0 %v2301_v58  ;;  %1234 = vmatpush1.bf16.msra.mxu1 %v2303_v59 }
 0x363   :  { %1194 = vmatprep.subr.bf16.mxu0 %v2307_v60  ;;  %1235 = vmatprep.subr.bf16.mxu1 %v2309_v61 }
 0x366   :  { %1195 = vmatpush1.bf16.msra.mxu0 %v2315_v63  ;;  %1236 = vmatpush1.bf16.msra.mxu1 %v2317_v1 }
 0x367   :  { %1196 = vmatprep.subr.bf16.mxu0 %v2321_v2  ;;  %1237 = vmatprep.subr.bf16.mxu1 %v2323_v3 }
 0x36a   :  { %1197 = vmatpush1.bf16.msra.mxu0 %v2327_v4  ;;  %1238 = vmatpush1.bf16.msra.mxu1 %v2329_v5 }
 0x36b   :  { %1296 = vmatprep.subr.bf16.mxu0 %v2233_v33  ;;  %1337 = vmatprep.subr.bf16.mxu1 %v2235_v34  ;;  %v2783_v33 = vld [vmem:[#allocation24_spill] sm:$0xff] }
 0x40d   :  { %v1102_v26 = vpop.f32.mrf.mxu0  ;;  %v1143_v11 = vpop.f32.mrf.mxu1 }
 0x40e   :  { %v1150_v23 = vadd.f32 %v1102_v26, %v2780_v8  ;;  %v1152_v53 = vadd.f32 %v1143_v11, %v2782_v21 }
 0x40f   :  { %v1104_v15 = vpop.f32.mrf.mxu0  ;;  %v1145_v16 = vpop.f32.mrf.mxu1 }
 0x410   :  { %v1154_v17 = vmul.f32 0.5, %v1150_v23  ;;  %v1151_v10 = vadd.f32 %v1104_v15, %v2781_v0  ;;  %v1153_v34 = vadd.f32 %v1145_v16, %v2783_v33 }
 0x411   :  { %v1106_v19 = vpop.f32.mrf.mxu0  ;;  %v1147_v25 = vpop.f32.mrf.mxu1 }
 0x412   :  { %1897 = vtanh.f32 %v1154_v17  ;;  %v1158_v9 = vmul.f32 0.5, %v1151_v10  ;;  %v1163_v13 = vmul.f32 0.5, %v1153_v34  ;;  %v2787_v17 = vld [vmem:[#allocation28_spill] sm:$0xff] }
 0x413   :  { %v1107_v29 = vpop.f32.mrf.mxu0  ;;  %v1148_v35 = vpop.f32.mrf.mxu1 }
 0x414   :  { %1899 = vtanh.f32 %v1158_v9 }
 0x415   :  { %1901 = vtanh.f32 %v1152_v53 }
 0x416   :  { %1903 = vtanh.f32 %v1163_v13 }
 0x41f   :  { %v1898_v22 = vpop.eup %1897 }
 0x420   :  { %v1156_v20 = vmul.f32 0.5, %v1898_v22 }
 0x421   :  { %v1900_v6 = vpop.eup %1899 }
 0x422   :  { %v1157_v27 = vadd.f32 0.5, %v1156_v20  ;;  %v1160_v31 = vmul.f32 0.5, %v1900_v6  ;;  %v1902_v18 = vpop.eup %1901 }
 0x423   :  { %v1904_v28 = vpop.eup %1903 }
 0x424   :  { %v1161_v30 = vadd.f32 0.5, %v1160_v31  ;;  %v1168_v24 = vmul.f32 %v1902_v18, %v1157_v27  ;;  %v1165_v12 = vmul.f32 0.5, %v1904_v28  ;;  %v2653_v28 = vld [vmem:[#allocation8 + $0xc0] ss:$16 sps:$4 sm:$0xff]  }
 0x426   :  { %v1167_v62 = vmul.f32 %v1161_v30, %v2548_v44  ;;  %v1166_v26 = vadd.f32 0.5, %v1165_v12  ;;  %v2639_v30 = vld [vmem:[#allocation8 + $0xe0] ss:$16 sps:$4 sm:$0xff]   ;;  %v2656_v12 = vld [vmem:[#allocation8 + $0xc8] ss:$16 sps:$4 sm:$0xff]  }
 0x428   :  { %v2590_v7 = vadd.f32 %v1168_v24, %v1167_v62  ;;  %v2642_v24 = vld [vmem:[#allocation8 + $0xe8] ss:$16 sps:$4 sm:$0xff]   ;;  %v2645_v62 = vld [vmem:[#allocation8 + $0xc4] ss:$16 sps:$4 sm:$0xff]  }
 0x42a   :  { %1905 = vtanh.f32 %v2590_v7 }
 0x437   :  { %v1906_v11 = vpop.eup %1905 }
 0x438   :  { %v1171_v8 = vmul.f32 %v1906_v11, %v1166_v26  ;;  %v2659_v26 = vld [vmem:[#allocation8 + $0xa4] ss:$16 sps:$4 sm:$0xff]   ;;  %v2662_v11 = vld [vmem:[#allocation8 + $0xac] ss:$16 sps:$4 sm:$0xff]  }
 0x43a   :  { %v1172_v23 = vpack.c.bf16 %v1171_v8, %v1171_v8  ;;  %v2665_v8 = vld [vmem:[#allocation8 + $0xa0] ss:$16 sps:$4 sm:$0xff]  }
 0x43c   :  { %1174 = vst [vmem:[#allocation12 + $0xc] sm:$0xf] %v1172_v23  ;;  %1215 = vmatmul.mubr.bf16.vlgmr.msra.gmra.mxu0 %v1172_v23  ;;  %1256 = vmatmul.mubr.bf16.vlgmr.msra.gmra.mxu1 %v1172_v23  ;;  %v2668_v23 = vld [vmem:[#allocation8 + $0xa8] ss:$16 sps:$4 sm:$0xff]  }
 0x43d   :  { %1297 = vmatpush1.bf16.msra.mxu0 %v2237_v36  ;;  %1338 = vmatpush1.bf16.msra.mxu1 %v2239_v37  ;;  %v2625_v36 = vld [vmem:[#allocation8 + $0xe4] ss:$16 sps:$4 sm:$0xff]   ;;  %v2628_v37 = vld [vmem:[#allocation8 + $0xec] ss:$16 sps:$4 sm:$0xff]  }
 0x43e   :  { %1298 = vmatprep.subr.bf16.mxu0 %v2243_v38  ;;  %1339 = vmatprep.subr.bf16.mxu1 %v2245_v39 }
 0x43f   :  { %1328 = vmatprep.mubr.bf16.mxu0 %v2779_v14  ;;  %1369 = vmatprep.mubr.bf16.mxu1 %v2779_v14 }
 0x441   :  { %1299 = vmatpush1.bf16.msra.mxu0 %v2247_v40  ;;  %1340 = vmatpush1.bf16.msra.mxu1 %v2251_v41  ;;  %v2784_v40 = vld [vmem:[#allocation25_spill] sm:$0xff] }
 0x442   :  { %1300 = vmatprep.subr.bf16.mxu0 %v2255_v42  ;;  %1341 = vmatprep.subr.bf16.mxu1 %v2257_v43 }
 0x445   :  { %1301 = vmatpush1.bf16.msra.mxu0 %v2261_v45  ;;  %1342 = vmatpush1.bf16.msra.mxu1 %v2263_v46  ;;  %v2785_v46 = vld [vmem:[#allocation27_spill] sm:$0xff] }
 0x446   :  { %1302 = vmatprep.subr.bf16.mxu0 %v2267_v47  ;;  %1343 = vmatprep.subr.bf16.mxu1 %v2271_v48 }
 0x449   :  { %1303 = vmatpush1.bf16.msra.mxu0 %v2273_v49  ;;  %1344 = vmatpush1.bf16.msra.mxu1 %v2275_v50  ;;  %v2786_v50 = vld [vmem:[#allocation26_spill] sm:$0xff] }
 0x44a   :  { %1304 = vmatprep.subr.bf16.mxu0 %v2279_v51  ;;  %1345 = vmatprep.subr.bf16.mxu1 %v2283_v52 }
 0x44d   :  { %1305 = vmatpush1.bf16.msra.mxu0 %v2289_v54  ;;  %1346 = vmatpush1.bf16.msra.mxu1 %v2291_v55 }
 0x44e   :  { %1306 = vmatprep.subr.bf16.mxu0 %v2295_v56  ;;  %1347 = vmatprep.subr.bf16.mxu1 %v2297_v57 }
 0x451   :  { %1307 = vmatpush1.bf16.msra.mxu0 %v2301_v58  ;;  %1348 = vmatpush1.bf16.msra.mxu1 %v2303_v59 }
 0x452   :  { %1308 = vmatprep.subr.bf16.mxu0 %v2307_v60  ;;  %1349 = vmatprep.subr.bf16.mxu1 %v2309_v61 }
 0x455   :  { %1309 = vmatpush1.bf16.msra.mxu0 %v2315_v63  ;;  %1350 = vmatpush1.bf16.msra.mxu1 %v2317_v1 }
 0x456   :  { %1310 = vmatprep.subr.bf16.mxu0 %v2321_v2  ;;  %1351 = vmatprep.subr.bf16.mxu1 %v2323_v3 }
 0x459   :  { %1311 = vmatpush1.bf16.msra.mxu0 %v2327_v4  ;;  %1352 = vmatpush1.bf16.msra.mxu1 %v2329_v5 }
 0x45a   :  { %1410 = vmatprep.subr.bf16.mxu0 %v2625_v36  ;;  %1451 = vmatprep.subr.bf16.mxu1 %v2628_v37 }
 0x4fc   :  { %v1216_v38 = vpop.f32.mrf.mxu0  ;;  %v1257_v39 = vpop.f32.mrf.mxu1 }
 0x4fd   :  { %v1264_v41 = vadd.f32 %v1216_v38, %v2784_v40  ;;  %v1266_v51 = vadd.f32 %v1257_v39, %v2786_v50  ;;  %v2671_v38 = vld [vmem:[#allocation8 + $0x84] ss:$16 sps:$4 sm:$0xff]   ;;  %v2674_v39 = vld [vmem:[#allocation8 + $0x8c] ss:$16 sps:$4 sm:$0xff]   ;;  %v2677_v40 = vld [vmem:[#allocation8 + $0x80] ss:$16 sps:$4 sm:$0xff]  }
 0x4fe   :  { %v1218_v42 = vpop.f32.mrf.mxu0  ;;  %v1259_v43 = vpop.f32.mrf.mxu1 }
 0x4ff   :  { %v1268_v45 = vmul.f32 0.5, %v1264_v41  ;;  %v1265_v47 = vadd.f32 %v1218_v42, %v2785_v46  ;;  %v1267_v0 = vadd.f32 %v1259_v43, %v2787_v17  ;;  %v2680_v41 = vld [vmem:[#allocation8 + $0x88] ss:$16 sps:$4 sm:$0xff]   ;;  %v2683_v42 = vld [vmem:[#allocation8 + $0x64] ss:$16 sps:$4 sm:$0xff]  }
 0x500   :  { %v1220_v48 = vpop.f32.mrf.mxu0  ;;  %v1261_v49 = vpop.f32.mrf.mxu1 }
 0x501   :  { %1907 = vtanh.f32 %v1268_v45  ;;  %v1272_v44 = vmul.f32 0.5, %v1265_v47  ;;  %v1277_v10 = vmul.f32 0.5, %v1267_v0 }
 0x502   :  { %v1221_v15 = vpop.f32.mrf.mxu0  ;;  %v1262_v16 = vpop.f32.mrf.mxu1 }
 0x503   :  { %1909 = vtanh.f32 %v1272_v44 }
 0x504   :  { %1911 = vtanh.f32 %v1266_v51 }
 0x505   :  { %1913 = vtanh.f32 %v1277_v10 }
 0x50e   :  { %v1908_v19 = vpop.eup %1907 }
 0x50f   :  { %v1270_v25 = vmul.f32 0.5, %v1908_v19 }
 0x510   :  { %v1910_v21 = vpop.eup %1909 }
 0x511   :  { %v1271_v53 = vadd.f32 0.5, %v1270_v25  ;;  %v1274_v9 = vmul.f32 0.5, %v1910_v21  ;;  %v1912_v29 = vpop.eup %1911 }
 0x512   :  { %v1914_v22 = vpop.eup %1913 }
 0x513   :  { %v1275_v35 = vadd.f32 0.5, %v1274_v9  ;;  %v1282_v33 = vmul.f32 %v1912_v29, %v1271_v53  ;;  %v1279_v20 = vmul.f32 0.5, %v1914_v22  ;;  %v1965_v9 = vld [vmem:[#allocation8 + $0x60] ss:$16 sps:$4 sm:$0xff]   ;;  %v1966_v29 = vld [vmem:[#allocation8 + $0x68] ss:$16 sps:$4 sm:$0xff]  }
 0x514   :  { %v1971_v22 = vld [vmem:[#allocation8 + $0x24] ss:$16 sps:$4 sm:$0xff]  }
 0x515   :  { %v1281_v34 = vmul.f32 %v1275_v35, %v2590_v7  ;;  %v1280_v6 = vadd.f32 0.5, %v1279_v20  ;;  %v2648_v7 = vld [vmem:[#allocation8 + $0xcc] ss:$16 sps:$4 sm:$0xff]   ;;  %v1967_v35 = vld [vmem:[#allocation8 + $0x44] ss:$16 sps:$4 sm:$0xff]  }
 0x516   :  { %v1972_v20 = vld [vmem:[#allocation8 + $0x2c] ss:$16 sps:$4 sm:$0xff]  }
 0x517   :  { %v2636_v13 = vadd.f32 %v1282_v33, %v1281_v34  ;;  %v1968_v33 = vld [vmem:[#allocation8 + $0x4c] ss:$16 sps:$4 sm:$0xff]   ;;  %v1969_v34 = vld [vmem:[#allocation8 + $0x40] ss:$16 sps:$4 sm:$0xff]  }
 0x519   :  { %1915 = vtanh.f32 %v2636_v13 }
 0x526   :  { %v1916_v27 = vpop.eup %1915 }
 0x527   :  { %v1285_v31 = vmul.f32 %v1916_v27, %v1280_v6  ;;  %v1973_v6 = vld [vmem:[#allocation8 + $0x20] ss:$16 sps:$4 sm:$0xff]   ;;  %v1974_v27 = vld [vmem:[#allocation8 + $0x28] ss:$16 sps:$4 sm:$0xff]  }
 0x529   :  { %v1286_v18 = vpack.c.bf16 %v1285_v31, %v1285_v31  ;;  %v1975_v31 = vld [vmem:[#allocation8 + $0x4] ss:$16 sps:$4 sm:$0xff]  }
 0x52b   :  { %1288 = vst [vmem:[#allocation12 + $0x10] sm:$0xf] %v1286_v18  ;;  %1329 = vmatmul.mubr.bf16.vlgmr.msra.gmra.mxu0 %v1286_v18  ;;  %1370 = vmatmul.mubr.bf16.vlgmr.msra.gmra.mxu1 %v1286_v18  ;;  %v1976_v18 = vld [vmem:[#allocation8 + $0xc] ss:$16 sps:$4 sm:$0xff]  }
 0x52c   :  { %1411 = vmatpush1.bf16.msra.mxu0 %v2639_v30  ;;  %1452 = vmatpush1.bf16.msra.mxu1 %v2642_v24 }
 0x52d   :  { %1412 = vmatprep.subr.bf16.mxu0 %v2645_v62  ;;  %1453 = vmatprep.subr.bf16.mxu1 %v2648_v7 }
 0x52e   :  { %1442 = vmatprep.mubr.bf16.mxu0 %v2779_v14  ;;  %1483 = vmatprep.mubr.bf16.mxu1 %v2779_v14 }
 0x530   :  { %1413 = vmatpush1.bf16.msra.mxu0 %v2653_v28  ;;  %1454 = vmatpush1.bf16.msra.mxu1 %v2656_v12 }
 0x531   :  { %1414 = vmatprep.subr.bf16.mxu0 %v2659_v26  ;;  %1455 = vmatprep.subr.bf16.mxu1 %v2662_v11 }
 0x534   :  { %1415 = vmatpush1.bf16.msra.mxu0 %v2665_v8  ;;  %1456 = vmatpush1.bf16.msra.mxu1 %v2668_v23 }
 0x535   :  { %1416 = vmatprep.subr.bf16.mxu0 %v2671_v38  ;;  %1457 = vmatprep.subr.bf16.mxu1 %v2674_v39 }
 0x538   :  { %1417 = vmatpush1.bf16.msra.mxu0 %v2677_v40  ;;  %1458 = vmatpush1.bf16.msra.mxu1 %v2680_v41 }
 0x539   :  { %1418 = vmatprep.subr.bf16.mxu0 %v2683_v42  ;;  %1459 = vmatprep.subr.bf16.mxu1 %v2283_v52 }
 0x53c   :  { %1419 = vmatpush1.bf16.msra.mxu0 %v2289_v54  ;;  %1460 = vmatpush1.bf16.msra.mxu1 %v2291_v55  ;;  %v2788_v55 = vld [vmem:[#allocation29_spill] sm:$0xff] }
 0x53d   :  { %1420 = vmatprep.subr.bf16.mxu0 %v2295_v56  ;;  %1461 = vmatprep.subr.bf16.mxu1 %v2297_v57 }
 0x540   :  { %1421 = vmatpush1.bf16.msra.mxu0 %v2301_v58  ;;  %1462 = vmatpush1.bf16.msra.mxu1 %v2303_v59 }
 0x541   :  { %1422 = vmatprep.subr.bf16.mxu0 %v2307_v60  ;;  %1463 = vmatprep.subr.bf16.mxu1 %v2309_v61  ;;  %v2789_v60 = vld [vmem:[#allocation31_spill] sm:$0xff] }
 0x544   :  { %1423 = vmatpush1.bf16.msra.mxu0 %v2315_v63  ;;  %1464 = vmatpush1.bf16.msra.mxu1 %v2317_v1 }
 0x545   :  { %1424 = vmatprep.subr.bf16.mxu0 %v2321_v2  ;;  %1465 = vmatprep.subr.bf16.mxu1 %v2323_v3  ;;  %v2790_v2 = vld [vmem:[#allocation30_spill] sm:$0xff] }
 0x548   :  { %1425 = vmatpush1.bf16.msra.mxu0 %v2327_v4  ;;  %1466 = vmatpush1.bf16.msra.mxu1 %v2329_v5 }
 0x549   :  { %1524 = vmatprep.subr.bf16.mxu0 %v2625_v36  ;;  %1565 = vmatprep.subr.bf16.mxu1 %v2628_v37  ;;  %v2791_v36 = vld [vmem:[#allocation32_spill] sm:$0xff] }
 0x5eb   :  { %v1330_v52 = vpop.f32.mrf.mxu0  ;;  %v1371_v54 = vpop.f32.mrf.mxu1 }
 0x5ec   :  { %v1378_v56 = vadd.f32 %v1330_v52, %v2788_v55  ;;  %v1380_v3 = vadd.f32 %v1371_v54, %v2790_v2 }
 0x5ed   :  { %v1332_v57 = vpop.f32.mrf.mxu0  ;;  %v1373_v58 = vpop.f32.mrf.mxu1 }
 0x5ee   :  { %v1382_v59 = vmul.f32 0.5, %v1378_v56  ;;  %v1379_v61 = vadd.f32 %v1332_v57, %v2789_v60  ;;  %v1381_v37 = vadd.f32 %v1373_v58, %v2791_v36  ;;  %v2795_v56 = vld [vmem:[#allocation36_spill] sm:$0xff] }
 0x5ef   :  { %v1334_v63 = vpop.f32.mrf.mxu0  ;;  %v1375_v1 = vpop.f32.mrf.mxu1 }
 0x5f0   :  { %1917 = vtanh.f32 %v1382_v59  ;;  %v1386_v4 = vmul.f32 0.5, %v1379_v61  ;;  %v1391_v45 = vmul.f32 0.5, %v1381_v37 }
 0x5f1   :  { %v1335_v5 = vpop.f32.mrf.mxu0  ;;  %v1376_v43 = vpop.f32.mrf.mxu1 }
 0x5f2   :  { %1919 = vtanh.f32 %v1386_v4 }
 0x5f3   :  { %1921 = vtanh.f32 %v1380_v3 }
 0x5f4   :  { %1923 = vtanh.f32 %v1391_v45 }
 0x5fd   :  { %v1918_v46 = vpop.eup %1917 }
 0x5fe   :  { %v1384_v47 = vmul.f32 0.5, %v1918_v46 }
 0x5ff   :  { %v1920_v48 = vpop.eup %1919 }
 0x600   :  { %v1385_v49 = vadd.f32 0.5, %v1384_v47  ;;  %v1388_v50 = vmul.f32 0.5, %v1920_v48  ;;  %v1922_v51 = vpop.eup %1921 }
 0x601   :  { %v1924_v0 = vpop.eup %1923 }
 0x602   :  { %v1389_v44 = vadd.f32 0.5, %v1388_v50  ;;  %v1396_v15 = vmul.f32 %v1922_v51, %v1385_v49  ;;  %v1393_v10 = vmul.f32 0.5, %v1924_v0  ;;  %v2796_v51 = vld [vmem:[#allocation37_spill] sm:$0xff] }
 0x604   :  { %v1395_v16 = vmul.f32 %v1389_v44, %v2636_v13  ;;  %v1394_v19 = vadd.f32 0.5, %v1393_v10  ;;  %v1970_v13 = vld [vmem:[#allocation8 + $0x48] ss:$16 sps:$4 sm:$0xff]  }
 0x606   :  { %v2708_v17 = vadd.f32 %v1396_v15, %v1395_v16 }
 0x608   :  { %1925 = vtanh.f32 %v2708_v17 }
 0x615   :  { %v1926_v25 = vpop.eup %1925 }
 0x616   :  { %v1399_v21 = vmul.f32 %v1926_v25, %v1394_v19  ;;  %v2797_v25 = vld [vmem:[#allocation38_spill] sm:$0xff] }
 0x618   :  { %v1400_v53 = vpack.c.bf16 %v1399_v21, %v1399_v21 }
 0x61a   :  { %1402 = vst [vmem:[#allocation12 + $0x14] sm:$0xf] %v1400_v53  ;;  %1443 = vmatmul.mubr.bf16.vlgmr.msra.gmra.mxu0 %v1400_v53  ;;  %1484 = vmatmul.mubr.bf16.vlgmr.msra.gmra.mxu1 %v1400_v53 }
 0x61b   :  { %1525 = vmatpush1.bf16.msra.mxu0 %v2639_v30  ;;  %1566 = vmatpush1.bf16.msra.mxu1 %v2642_v24  ;;  %v1977_v30 = vld [vmem:[#allocation8] ss:$16 sps:$4 sm:$0xff]   ;;  %v1978_v24 = vld [vmem:[#allocation8 + $0x8] ss:$16 sps:$4 sm:$0xff]  }
 0x61c   :  { %1526 = vmatprep.subr.bf16.mxu0 %v2645_v62  ;;  %1567 = vmatprep.subr.bf16.mxu1 %v2648_v7 }
 0x61d   :  { %1556 = vmatprep.mubr.bf16.mxu0 %v2779_v14  ;;  %1597 = vmatprep.mubr.bf16.mxu1 %v2779_v14  ;;  %v1964_v14 = vld [vmem:[#allocation8 + $0x6c] ss:$16 sps:$4 sm:$0xff]  }
 0x61f   :  { %1527 = vmatpush1.bf16.msra.mxu0 %v2653_v28  ;;  %1568 = vmatpush1.bf16.msra.mxu1 %v2656_v12  ;;  %v2792_v28 = vld [vmem:[#allocation33_spill] sm:$0xff] }
 0x620   :  { %1528 = vmatprep.subr.bf16.mxu0 %v2659_v26  ;;  %1569 = vmatprep.subr.bf16.mxu1 %v2662_v11 }
 0x623   :  { %1529 = vmatpush1.bf16.msra.mxu0 %v2665_v8  ;;  %1570 = vmatpush1.bf16.msra.mxu1 %v2668_v23  ;;  %v2793_v23 = vld [vmem:[#allocation35_spill] sm:$0xff] }
 0x624   :  { %1530 = vmatprep.subr.bf16.mxu0 %v2671_v38  ;;  %1571 = vmatprep.subr.bf16.mxu1 %v2674_v39 }
 0x627   :  { %1531 = vmatpush1.bf16.msra.mxu0 %v2677_v40  ;;  %1572 = vmatpush1.bf16.msra.mxu1 %v2680_v41  ;;  %v2794_v41 = vld [vmem:[#allocation34_spill] sm:$0xff] }
 0x628   :  { %1532 = vmatprep.subr.bf16.mxu0 %v2683_v42  ;;  %1573 = vmatprep.subr.bf16.mxu1 %v1964_v14 }
 0x62b   :  { %1533 = vmatpush1.bf16.msra.mxu0 %v1965_v9  ;;  %1574 = vmatpush1.bf16.msra.mxu1 %v1966_v29  ;;  %v2798_v29 = vld [vmem:[#allocation39_spill] sm:$0xff] }
 0x62c   :  { %1534 = vmatprep.subr.bf16.mxu0 %v1967_v35  ;;  %1575 = vmatprep.subr.bf16.mxu1 %v1968_v33 }
 0x62f   :  { %1535 = vmatpush1.bf16.msra.mxu0 %v1969_v34  ;;  %1576 = vmatpush1.bf16.msra.mxu1 %v1970_v13 }
 0x630   :  { %1536 = vmatprep.subr.bf16.mxu0 %v1971_v22  ;;  %1577 = vmatprep.subr.bf16.mxu1 %v1972_v20 }
 0x633   :  { %1537 = vmatpush1.bf16.msra.mxu0 %v1973_v6  ;;  %1578 = vmatpush1.bf16.msra.mxu1 %v1974_v27 }
 0x634   :  { %1538 = vmatprep.subr.bf16.mxu0 %v1975_v31  ;;  %1579 = vmatprep.subr.bf16.mxu1 %v1976_v18 }
 0x637   :  { %1539 = vmatpush1.bf16.msra.mxu0 %v1977_v30  ;;  %1580 = vmatpush1.bf16.msra.mxu1 %v1978_v24 }
 0x6da   :  { %v1444_v62 = vpop.f32.mrf.mxu0  ;;  %v1485_v7 = vpop.f32.mrf.mxu1 }
 0x6db   :  { %v1492_v12 = vadd.f32 %v1444_v62, %v2792_v28  ;;  %v1494_v42 = vadd.f32 %v1485_v7, %v2794_v41 }
 0x6dc   :  { %v1446_v26 = vpop.f32.mrf.mxu0  ;;  %v1487_v11 = vpop.f32.mrf.mxu1 }
 0x6dd   :  { %v1496_v8 = vmul.f32 0.5, %v1492_v12  ;;  %v1493_v38 = vadd.f32 %v1446_v26, %v2793_v23  ;;  %v1495_v57 = vadd.f32 %v1487_v11, %v2795_v56 }
 0x6de   :  { %v1448_v39 = vpop.f32.mrf.mxu0  ;;  %v1489_v40 = vpop.f32.mrf.mxu1 }
 0x6df   :  { %1927 = vtanh.f32 %v1496_v8  ;;  %v1500_v52 = vmul.f32 0.5, %v1493_v38  ;;  %v1505_v58 = vmul.f32 0.5, %v1495_v57 }
 0x6e0   :  { %v1449_v54 = vpop.f32.mrf.mxu0  ;;  %v1490_v55 = vpop.f32.mrf.mxu1 }
 0x6e1   :  { %1929 = vtanh.f32 %v1500_v52 }
 0x6e2   :  { %1931 = vtanh.f32 %v1494_v42 }
 0x6e3   :  { %1933 = vtanh.f32 %v1505_v58 }
 0x6ec   :  { %v1928_v59 = vpop.eup %1927 }
 0x6ed   :  { %v1498_v60 = vmul.f32 0.5, %v1928_v59 }
 0x6ee   :  { %v1930_v61 = vpop.eup %1929 }
 0x6ef   :  { %v1499_v63 = vadd.f32 0.5, %v1498_v60  ;;  %v1502_v1 = vmul.f32 0.5, %v1930_v61  ;;  %v1932_v2 = vpop.eup %1931 }
 0x6f0   :  { %v1934_v36 = vpop.eup %1933 }
 0x6f1   :  { %v1503_v3 = vadd.f32 0.5, %v1502_v1  ;;  %v1510_v4 = vmul.f32 %v1932_v2, %v1499_v63  ;;  %v1507_v37 = vmul.f32 0.5, %v1934_v36 }
 0x6f3   :  { %v1509_v5 = vmul.f32 %v1503_v3, %v2708_v17  ;;  %v1508_v45 = vadd.f32 0.5, %v1507_v37 }
 0x6f5   :  { %v1511_v43 = vadd.f32 %v1510_v4, %v1509_v5 }
 0x6f7   :  { %1935 = vtanh.f32 %v1511_v43 }
 0x704   :  { %v1936_v46 = vpop.eup %1935 }
 0x705   :  { %v1513_v47 = vmul.f32 %v1936_v46, %v1508_v45 }
 0x707   :  { %v1514_v48 = vpack.c.bf16 %v1513_v47, %v1513_v47 }
 0x709   :  { %1516 = vst [vmem:[#allocation12 + $0x18] sm:$0xf] %v1514_v48  ;;  %1557 = vmatmul.mubr.bf16.vlgmr.msra.gmra.mxu0 %v1514_v48  ;;  %1598 = vmatmul.mubr.bf16.vlgmr.msra.gmra.mxu1 %v1514_v48 }
 0x7c9   :  { %v1558_v49 = vpop.f32.mrf.mxu0  ;;  %v1599_v50 = vpop.f32.mrf.mxu1 }
 0x7ca   :  { %v1606_v44 = vadd.f32 %v1558_v49, %v2796_v51  ;;  %v1608_v21 = vadd.f32 %v1599_v50, %v2797_v25 }
 0x7cb   :  { %v1560_v15 = vpop.f32.mrf.mxu0  ;;  %v1601_v16 = vpop.f32.mrf.mxu1 }
 0x7cc   :  { %v1610_v0 = vmul.f32 0.5, %v1606_v44  ;;  %v1607_v17 = vadd.f32 %v1560_v15, %v2451_v32  ;;  %v1609_v35 = vadd.f32 %v1601_v16, %v2798_v29 }
 0x7cd   :  { %v1562_v10 = vpop.f32.mrf.mxu0  ;;  %v1603_v19 = vpop.f32.mrf.mxu1 }
 0x7ce   :  { %1937 = vtanh.f32 %v1610_v0  ;;  %v1614_v53 = vmul.f32 0.5, %v1607_v17  ;;  %v1619_v33 = vmul.f32 0.5, %v1609_v35 }
 0x7cf   :  { %v1563_v14 = vpop.f32.mrf.mxu0  ;;  %v1604_v9 = vpop.f32.mrf.mxu1 }
 0x7d0   :  { %1939 = vtanh.f32 %v1614_v53 }
 0x7d1   :  { %1941 = vtanh.f32 %v1608_v21 }
 0x7d2   :  { %1943 = vtanh.f32 %v1619_v33 }
 0x7db   :  { %v1938_v34 = vpop.eup %1937 }
 0x7dc   :  { %v1612_v13 = vmul.f32 0.5, %v1938_v34 }
 0x7dd   :  { %v1940_v22 = vpop.eup %1939 }
 0x7de   :  { %v1613_v20 = vadd.f32 0.5, %v1612_v13  ;;  %v1616_v6 = vmul.f32 0.5, %v1940_v22  ;;  %v1942_v32 = vpop.eup %1941 }
 0x7df   :  { %v1944_v24 = vpop.eup %1943 }
 0x7e0   :  { %v1617_v27 = vadd.f32 0.5, %v1616_v6  ;;  %v1624_v31 = vmul.f32 %v1942_v32, %v1613_v20  ;;  %v1621_v62 = vmul.f32 0.5, %v1944_v24 }
 0x7e2   :  { %v1623_v18 = vmul.f32 %v1617_v27, %v1511_v43  ;;  %v1622_v7 = vadd.f32 0.5, %v1621_v62 }
 0x7e4   :  { %v1625_v30 = vadd.f32 %v1624_v31, %v1623_v18 }
 0x7e6   :  { %1945 = vtanh.f32 %v1625_v30  ;;  %1632 = vst [vmem:[#allocation15] sm:$0xff] %v1625_v30 }
 0x7f3   :  { %v1946_v28 = vpop.eup %1945 }
 0x7f4   :  { %v1627_v12 = vmul.f32 %v1946_v28, %v1622_v7 }
 0x7f6   :  { %v1628_v26 = vpack.c.bf16 %v1627_v12, %v1627_v12  ;;  %1631 = vst [vmem:[#allocation13] sm:$0xff] %v1627_v12 }
 0x7f7   :  { %2090 = shalt.err (!%p2087_p1)
}
 0x7f8   :  { %1654 = dma.vmem_to_hbm [thread:$0]  %s1652_s30, 128, %s2756_s7, [#allocation14]   ;;  %1630 = vst [vmem:[#allocation12 + $0x1c] sm:$0xf] %v1628_v26 }
 0x7f9   :  { %s2099_s17 = scalar_lea.vmem %s1662_s11, 128  ;;  %p2104_p3 = scmp.lt.s32.totalorder %s1662_s11, %s1662_s11 }
 0x7fa   :  { %p2100_p2 = scmp.ne.s32.totalorder %s1662_s11, %s2099_s17  ;;  %p2105_p4 = scmp.lt.s32.totalorder %s2099_s17, %s2099_s17 }
 0x7fc   :  { %p2106_p5 = por %p2105_p4, %p2104_p3 }
 0x7fe   :  { %p2107_p6 = pnand %p2106_p5, %p2100_p2 }
 0x800   :  { %2110 = shalt.err (!%p2107_p6)
}
 0x801   :  { %1664 = dma.vmem_to_hbm [thread:$0]  %s1662_s11, 128, %s2757_s8, [#allocation14]  }
 0x802   :  { %s2119_s21 = scalar_lea.vmem %s1639_s13, 512  ;;  %p2124_p8 = scmp.lt.s32.totalorder %s1639_s13, %s1639_s13 }
 0x803   :  { %p2120_p7 = scmp.ne.s32.totalorder %s1639_s13, %s2119_s21  ;;  %p2125_p9 = scmp.lt.s32.totalorder %s2119_s21, %s2119_s21 }
 0x805   :  { %p2126_p10 = por %p2125_p9, %p2124_p8 }
 0x807   :  { %p2127_p11 = pnand %p2126_p10, %p2120_p7 }
 0x809   :  { %2130 = shalt.err (!%p2127_p11)
}
 0x80a   :  { %1644 = dma.vmem_to_hbm [thread:$0]  %s1639_s13, 512, %s2755_s6, [#allocation5], %s2154_s1, %s2154_s1, %s2155_s20  }
 0x80b   :  { %2145 = dma.done.wait [#allocation5], 512  }
 0x80c   :  { %2146 = vsyncadd [#allocation5], 4294966784 }
 0x80d   :  { %2147 = dma.done.wait [#allocation14], 256  }
 0x80e   :  { %2148 = vsyncadd [#allocation14], 4294967040 }
 0x80f   :  { %1674 = vsyncpa [#allocation4], 1 }
 0x810   :  { %1675 = vsyncpa [#allocation7], 1 }
 0x811   :  { %1676 = vsyncpa [#allocation10], 1 }
 0x812   :  { %1677 = vsyncpa [#allocation5], 1 }
 0x813   :  { %1678 = vsyncpa [#allocation14], 1 }

</bundles_post_ra>
